<compile_context>
chip_gen: v5e
topology: v5e:2x2
jax: 0.10.0
libtpu: 0.0.40
codegen_flags: <defaults>
</compile_context>

<pallas_src>
import functools
import math

import jax
import jax.numpy as jnp
from jax.experimental import pallas as pl
from jax.experimental.pallas import tpu as pltpu

# ----------------------- scaled-down config -----------------------
VOCAB = 100
TYPE_VOCAB = 2
MAX_POS = 64
HIDDEN = 128                 # bert-base: 768
N_LAYERS = 4                 # bert-base: 12 (need >=4 for hidden_states[-4])
N_HEADS = 4                  # bert-base: 12
HEAD_DIM = HIDDEN // N_HEADS
INTERMEDIATE = 256           # bert-base: 3072
OUTPUT_DIM = 8
CLS_IN = 4 * HIDDEN          # analogue of 3072 = 4 * 768
DROPOUT_RATE = 0.1           # unused at inference
LN_EPS = 1e-12               # BERT LayerNorm eps

BATCH = 2
SEQ = 8


# ----------------------- fused encoder kernel (one grid step = one layer) ----
def _encoder_layer_kernel(emb_ref, mask_ref,
                          emb_g_ref, emb_b_ref,
                          wqkv_ref, bqkv_ref, wo_ref, bo_ref,
                          ln1_g_ref, ln1_b_ref,
                          w1_ref, b1_ref, w2_ref, b2_ref,
                          ln2_g_ref, ln2_b_ref,
                          cls_w_ref, cls_b_ref,
                          out_ref,
                          h_ref, acc_ref, *, batch, seq):
    li = pl.program_id(0)
    rows = batch * seq
    scale = 1.0 / math.sqrt(HEAD_DIM)

    def ln(x, g, b):
        # f32 LayerNorm; residual already folded into x by the caller.
        mean = jnp.mean(x, axis=-1, keepdims=True)
        var = jnp.mean(jnp.square(x - mean), axis=-1, keepdims=True)
        return (x - mean) * jax.lax.rsqrt(var + LN_EPS) * g + b

    def mm(x, w_bf16, b_f32):
        # bf16 MXU operands, f32 accumulation, bias fused into the epilogue.
        return jnp.dot(x.astype(jnp.bfloat16), w_bf16,
                       preferred_element_type=jnp.float32) + b_f32

    # ---- first grid step: embedding LayerNorm + zero the logits accumulator --
    @pl.when(li == 0)
    def _init():
        e = emb_ref[...].reshape(rows, HIDDEN)
        h_ref[...] = ln(e, emb_g_ref[...], emb_b_ref[...]).reshape(
            batch, seq, HIDDEN)
        acc_ref[...] = jnp.zeros_like(acc_ref)

    x = h_ref[...].reshape(rows, HIDDEN)                     # (B*S, H) f32

    # ---- fused Q/K/V projection: one (B*S, H) x (H, 3H) matmul ----
    qkv = mm(x, wqkv_ref[...], bqkv_ref[...])                # (B*S, 3H) f32
    q = ((qkv[:, 0:HIDDEN] * scale)
         .reshape(batch, seq, HIDDEN).astype(jnp.bfloat16))  # scale folded in
    k = (qkv[:, HIDDEN:2 * HIDDEN]
         .reshape(batch, seq, HIDDEN).astype(jnp.bfloat16))
    v = (qkv[:, 2 * HIDDEN:3 * HIDDEN]
         .reshape(batch, seq, HIDDEN).astype(jnp.bfloat16))
    mask3 = mask_ref[...]                                    # (B, S, S) f32

    # ---- attention: per head, batched over B (one softmax per head) ----
    ctx_heads = []
    for hh in range(N_HEADS):
        lo = hh * HEAD_DIM
        qh = q[:, :, lo:lo + HEAD_DIM]                       # (B, S, dh) bf16
        kh = k[:, :, lo:lo + HEAD_DIM]
        vh = v[:, :, lo:lo + HEAD_DIM]
        s = jnp.einsum('bqd,bkd->bqk', qh, kh,
                       preferred_element_type=jnp.float32)   # (B, S, S) f32
        s = s + mask3
        s = s - jnp.max(s, axis=-1, keepdims=True)
        p = jnp.exp(s)
        p = p * pl.reciprocal(jnp.sum(p, axis=-1, keepdims=True), approx=True)
        ctx_heads.append(jnp.einsum('bqk,bkd->bqd',
                                    p.astype(jnp.bfloat16), vh,
                                    preferred_element_type=jnp.float32))
    ctx = jnp.concatenate(ctx_heads, axis=-1).reshape(rows, HIDDEN)

    # ---- output projection + fused residual + LayerNorm ----
    attn_out = mm(ctx, wo_ref[...], bo_ref[...])
    h1 = ln(attn_out + x, ln1_g_ref[...], ln1_b_ref[...])

    # ---- FFN (matmul + bias + GELU) + fused residual + LayerNorm ----
    ff = mm(h1, w1_ref[...], b1_ref[...])
    # TODO(synk): BERT uses exact erf-GELU; tanh approximation is used here.
    ff = jax.nn.gelu(ff, approximate=True)
    ff = mm(ff, w2_ref[...], b2_ref[...])
    h2 = ln(ff + h1, ln2_g_ref[...], ln2_b_ref[...])         # (B*S, H) f32

    h_ref[...] = h2.reshape(batch, seq, HIDDEN)

    # ---- classifier contribution of this layer's CLS row ----
    # cls_w_ref is this layer's (H, OUT) slice of the (4H, OUT) classifier
    # weight (index_map N_LAYERS-1-l), so summing the per-layer contributions
    # reproduces logits = concat(h[-1],h[-2],h[-3],h[-4])[:,0,:] @ W exactly.
    cls_h = h2.reshape(batch, seq, HIDDEN)[:, 0:1, :].reshape(batch, HIDDEN)
    acc_ref[...] += jnp.dot(cls_h.astype(jnp.bfloat16), cls_w_ref[...],
                            preferred_element_type=jnp.float32)

    # ---- final grid step: add bias and emit logits ----
    @pl.when(li == N_LAYERS - 1)
    def _final():
        # TODO(synk): dropout is identity (eval mode); stochastic dropout
        # (rate=DROPOUT_RATE) is not implemented.
        out_ref[...] = (acc_ref[...] + cls_b_ref[...]).astype(out_ref.dtype)


# ----------------------- wrapper -----------------------
def _stacked(shape):
    """Per-layer stacked weight (L, *shape): stream block l each grid step."""
    nd = len(shape)
    return pl.BlockSpec((None,) + shape, lambda l: (l,) + (0,) * nd)


def _replicated(shape):
    """Full array, same block every grid step (loaded once)."""
    nd = len(shape)
    return pl.BlockSpec(shape, lambda l: (0,) * nd)


def fin_forward(params, input_ids, token_type_ids, attention_mask):
    B, S = input_ids.shape

    # --- embedding table gathers are XLA glue; everything else is in-kernel ---
    pos_ids = jnp.arange(S, dtype=jnp.int32)
    emb = (jnp.take(params["word_emb"], input_ids, axis=0)
           + jnp.take(params["pos_emb"], pos_ids, axis=0)[None, :, :]
           + jnp.take(params["type_emb"], token_type_ids, axis=0))   # (B, S, H)

    # BERT additive mask, pre-broadcast ONCE to (B, S_query, S_key).
    add_mask = (1.0 - attention_mask.astype(jnp.float32)) * -10000.0  # (B, S)
    mask3 = jnp.broadcast_to(add_mask[:, None, :], (B, S, S))

    inputs = (emb, mask3,
              params["emb_ln_g"], params["emb_ln_b"],
              params["wqkv"], params["bqkv"], params["wo"], params["bo"],
              params["ln1_g"], params["ln1_b"],
              params["w1"], params["b1"], params["w2"], params["b2"],
              params["ln2_g"], params["ln2_b"],
              params["cls_w"], params["cls_b"])

    in_specs = [
        _replicated((B, S, HIDDEN)),                 # emb
        _replicated((B, S, S)),                      # mask3
        _replicated((1, HIDDEN)),                    # emb_ln_g
        _replicated((1, HIDDEN)),                    # emb_ln_b
        _stacked((HIDDEN, 3 * HIDDEN)),              # wqkv
        _stacked((1, 3 * HIDDEN)),                   # bqkv
        _stacked((HIDDEN, HIDDEN)),                  # wo
        _stacked((1, HIDDEN)),                       # bo
        _stacked((1, HIDDEN)),                       # ln1_g
        _stacked((1, HIDDEN)),                       # ln1_b
        _stacked((HIDDEN, INTERMEDIATE)),            # w1
        _stacked((1, INTERMEDIATE)),                 # b1
        _stacked((INTERMEDIATE, HIDDEN)),            # w2
        _stacked((1, HIDDEN)),                       # b2
        _stacked((1, HIDDEN)),                       # ln2_g
        _stacked((1, HIDDEN)),                       # ln2_b
        # classifier weight slice for this layer: layer L-1 -> block 0, etc.
        pl.BlockSpec((HIDDEN, OUTPUT_DIM), lambda l: (N_LAYERS - 1 - l, 0)),
        _replicated((1, OUTPUT_DIM)),                # cls_b
    ]
    out_specs = pl.BlockSpec((B, OUTPUT_DIM), lambda l: (0, 0))

    # Advisory cost estimate (helps XLA schedule the embedding gathers around
    # the custom call).
    flops_layer = (2 * B * S * HIDDEN * 3 * HIDDEN
                   + 2 * 2 * B * N_HEADS * S * S * HEAD_DIM
                   + 2 * B * S * HIDDEN * HIDDEN
                   + 2 * 2 * B * S * HIDDEN * INTERMEDIATE
                   + 2 * B * HIDDEN * OUTPUT_DIM)
    transcendentals = N_LAYERS * (B * N_HEADS * S * S + B * S * INTERMEDIATE)
    bytes_accessed = (sum(int(x.size) * x.dtype.itemsize for x in inputs)
                      + B * OUTPUT_DIM * 4)

    kernel = functools.partial(_encoder_layer_kernel, batch=B, seq=S)
    return pl.pallas_call(
        kernel,
        out_shape=jax.ShapeDtypeStruct((B, OUTPUT_DIM), jnp.float32),
        grid_spec=pltpu.PrefetchScalarGridSpec(
            num_scalar_prefetch=0,
            grid=(N_LAYERS,),
            in_specs=in_specs,
            out_specs=out_specs,
            scratch_shapes=[
                pltpu.VMEM((B, S, HIDDEN), jnp.float32),   # persistent hidden
                pltpu.VMEM((B, OUTPUT_DIM), jnp.float32),  # logits accumulator
            ]),
        compiler_params=pltpu.CompilerParams(
            # The layer axis is a sequential dependency ("arbitrary").
            # TODO(synk): at realistic batch/seq add a leading "parallel"
            # batch/row-tile axis so v7x's second TensorCore is used.
            dimension_semantics=("arbitrary",),
            # Budgeted for v7x's 64 MiB VMEM (double-buffered layer weights +
            # activations fit comfortably); harmless on v5e/v6e.
            vmem_limit_bytes=48 * 1024 * 1024),
        cost_estimate=pl.CostEstimate(flops=int(flops_layer * N_LAYERS),
                                      transcendentals=int(transcendentals),
                                      bytes_accessed=int(bytes_accessed)),
    )(*inputs)


# ----------------------- parameter init (deterministic) -----------------------
def init_params(key):
    ks = jax.random.split(key, 8)

    def nrm(k, shape):
        return jax.random.normal(k, shape, jnp.float32) * 0.02

    L = N_LAYERS
    p = {}
    p["word_emb"] = nrm(ks[0], (VOCAB, HIDDEN))
    p["pos_emb"] = nrm(ks[1], (MAX_POS, HIDDEN))
    p["type_emb"] = nrm(ks[2], (TYPE_VOCAB, HIDDEN))
    p["emb_ln_g"] = jnp.ones((1, HIDDEN), jnp.float32)
    p["emb_ln_b"] = jnp.zeros((1, HIDDEN), jnp.float32)

    # Per-layer weights stacked on a leading L axis; matmul weights stored in
    # bf16 (MXU operand dtype), biases / LN params in f32.
    p["wqkv"] = nrm(ks[3], (L, HIDDEN, 3 * HIDDEN)).astype(jnp.bfloat16)
    p["bqkv"] = jnp.zeros((L, 1, 3 * HIDDEN), jnp.float32)
    p["wo"] = nrm(ks[4], (L, HIDDEN, HIDDEN)).astype(jnp.bfloat16)
    p["bo"] = jnp.zeros((L, 1, HIDDEN), jnp.float32)
    p["ln1_g"] = jnp.ones((L, 1, HIDDEN), jnp.float32)
    p["ln1_b"] = jnp.zeros((L, 1, HIDDEN), jnp.float32)
    p["w1"] = nrm(ks[5], (L, HIDDEN, INTERMEDIATE)).astype(jnp.bfloat16)
    p["b1"] = jnp.zeros((L, 1, INTERMEDIATE), jnp.float32)
    p["w2"] = nrm(ks[6], (L, INTERMEDIATE, HIDDEN)).astype(jnp.bfloat16)
    p["b2"] = jnp.zeros((L, 1, HIDDEN), jnp.float32)
    p["ln2_g"] = jnp.ones((L, 1, HIDDEN), jnp.float32)
    p["ln2_b"] = jnp.zeros((L, 1, HIDDEN), jnp.float32)

    p["cls_w"] = nrm(ks[7], (CLS_IN, OUTPUT_DIM)).astype(jnp.bfloat16)
    p["cls_b"] = jnp.zeros((1, OUTPUT_DIM), jnp.float32)
    return p


# ----------------------- main -----------------------
if __name__ == "__main__":
    key = jax.random.PRNGKey(0)
    k_params, k_ids = jax.random.split(key)

    params = init_params(k_params)

    input_ids = jax.random.randint(k_ids, (BATCH, SEQ), 0, VOCAB, dtype=jnp.int32)
    token_type_ids = jnp.zeros((BATCH, SEQ), jnp.int32)
    attention_mask = jnp.ones((BATCH, SEQ), jnp.int32)

    out = jax.jit(fin_forward)(params, input_ids, token_type_ids, attention_mask)
    out = jax.block_until_ready(out)

    assert out.shape == (BATCH, OUTPUT_DIM)
    assert bool(jnp.all(jnp.isfinite(out)))
    print("KERNEL_OK")
</pallas_src>

<mosaic_0001>
module attributes {stable_mosaic.version = 11 : i64} {
  func.func @_encoder_layer_kernel(%arg0: i32, %arg1: memref<2x8x128xf32, #tpu.memory_space<vmem>>, %arg2: memref<2x8x8xf32, #tpu.memory_space<vmem>>, %arg3: memref<1x128xf32, #tpu.memory_space<vmem>>, %arg4: memref<1x128xf32, #tpu.memory_space<vmem>>, %arg5: memref<1x128x384xbf16, #tpu.memory_space<vmem>>, %arg6: memref<1x1x384xf32, #tpu.memory_space<vmem>>, %arg7: memref<1x128x128xbf16, #tpu.memory_space<vmem>>, %arg8: memref<1x1x128xf32, #tpu.memory_space<vmem>>, %arg9: memref<1x1x128xf32, #tpu.memory_space<vmem>>, %arg10: memref<1x1x128xf32, #tpu.memory_space<vmem>>, %arg11: memref<1x128x256xbf16, #tpu.memory_space<vmem>>, %arg12: memref<1x1x256xf32, #tpu.memory_space<vmem>>, %arg13: memref<1x256x128xbf16, #tpu.memory_space<vmem>>, %arg14: memref<1x1x128xf32, #tpu.memory_space<vmem>>, %arg15: memref<1x1x128xf32, #tpu.memory_space<vmem>>, %arg16: memref<1x1x128xf32, #tpu.memory_space<vmem>>, %arg17: memref<128x8xbf16, #tpu.memory_space<vmem>>, %arg18: memref<1x8xf32, #tpu.memory_space<vmem>>, %arg19: memref<2x8xf32, #tpu.memory_space<vmem>>, %arg20: memref<2x8x128xf32, #tpu.memory_space<vmem>>, %arg21: memref<2x8xf32, #tpu.memory_space<vmem>>) attributes {dimension_semantics = [#tpu.dimension_semantics<arbitrary>], iteration_bounds = array<i64: 4>, scalar_prefetch = 0 : i64, scratch_operands = 2 : i64, tpu.core_type = #tpu.core_type<tc>, window_params = [{pipeline_mode = #tpu.pipeline_mode<synchronous>, transform_indices = @transform_0, window_bounds = array<i64: 2, 8, 128>}, {pipeline_mode = #tpu.pipeline_mode<synchronous>, transform_indices = @transform_1, window_bounds = array<i64: 2, 8, 8>}, {pipeline_mode = #tpu.pipeline_mode<synchronous>, transform_indices = @transform_2, window_bounds = array<i64: 1, 128>}, {pipeline_mode = #tpu.pipeline_mode<synchronous>, transform_indices = @transform_3, window_bounds = array<i64: 1, 128>}, {transform_indices = @transform_4, window_bounds = array<i64: 1, 128, 384>}, {transform_indices = @transform_5, window_bounds = array<i64: 1, 1, 384>}, {transform_indices = @transform_6, window_bounds = array<i64: 1, 128, 128>}, {transform_indices = @transform_7, window_bounds = array<i64: 1, 1, 128>}, {transform_indices = @transform_8, window_bounds = array<i64: 1, 1, 128>}, {transform_indices = @transform_9, window_bounds = array<i64: 1, 1, 128>}, {transform_indices = @transform_10, window_bounds = array<i64: 1, 128, 256>}, {transform_indices = @transform_11, window_bounds = array<i64: 1, 1, 256>}, {transform_indices = @transform_12, window_bounds = array<i64: 1, 256, 128>}, {transform_indices = @transform_13, window_bounds = array<i64: 1, 1, 128>}, {transform_indices = @transform_14, window_bounds = array<i64: 1, 1, 128>}, {transform_indices = @transform_15, window_bounds = array<i64: 1, 1, 128>}, {transform_indices = @transform_16, window_bounds = array<i64: 128, 8>}, {pipeline_mode = #tpu.pipeline_mode<synchronous>, transform_indices = @transform_17, window_bounds = array<i64: 1, 8>}, {pipeline_mode = #tpu.pipeline_mode<synchronous>, transform_indices = @transform_18, window_bounds = array<i64: 2, 8>}]} {
    %c0_i32 = arith.constant 0 : i32
    %0 = arith.cmpi eq, %arg0, %c0_i32 : i32
    %1 = arith.extui %0 : i1 to i32
    %c0_i32_0 = arith.constant 0 : i32
    %2 = arith.cmpi ne, %1, %c0_i32_0 : i32
    scf.if %2 {
      %c0_87 = arith.constant 0 : index
      %c0_88 = arith.constant 0 : index
      %c0_89 = arith.constant 0 : index
      %200 = vector.load %arg1[%c0_87, %c0_88, %c0_89] : memref<2x8x128xf32, #tpu.memory_space<vmem>>, vector<2x8x128xf32>
      %201 = vector.shape_cast %200 : vector<2x8x128xf32> to vector<16x128xf32>
      %c0_90 = arith.constant 0 : index
      %c0_91 = arith.constant 0 : index
      %202 = vector.load %arg3[%c0_90, %c0_91] : memref<1x128xf32, #tpu.memory_space<vmem>>, vector<1x128xf32>
      %c0_92 = arith.constant 0 : index
      %c0_93 = arith.constant 0 : index
      %203 = vector.load %arg4[%c0_92, %c0_93] : memref<1x128xf32, #tpu.memory_space<vmem>>, vector<1x128xf32>
      %cst_94 = arith.constant dense<0.000000e+00> : vector<16xf32>
      %204 = vector.multi_reduction <add>, %201, %cst_94 [1] : vector<16x128xf32> to vector<16xf32>
      %205 = vector.shape_cast %204 : vector<16xf32> to vector<16x1xf32>
      %cst_95 = arith.constant 1.280000e+02 : f32
      %206 = vector.broadcast %cst_95 : f32 to vector<16x1xf32>
      %207 = arith.divf %205, %206 : vector<16x1xf32>
      %208 = vector.broadcast %207 : vector<16x1xf32> to vector<16x128xf32>
      %209 = arith.subf %201, %208 : vector<16x128xf32>
      %210 = arith.mulf %209, %209 : vector<16x128xf32>
      %cst_96 = arith.constant dense<0.000000e+00> : vector<16xf32>
      %211 = vector.multi_reduction <add>, %210, %cst_96 [1] : vector<16x128xf32> to vector<16xf32>
      %212 = vector.shape_cast %211 : vector<16xf32> to vector<16x1xf32>
      %cst_97 = arith.constant 1.280000e+02 : f32
      %213 = vector.broadcast %cst_97 : f32 to vector<16x1xf32>
      %214 = arith.divf %212, %213 : vector<16x1xf32>
      %215 = vector.broadcast %207 : vector<16x1xf32> to vector<16x128xf32>
      %216 = arith.subf %201, %215 : vector<16x128xf32>
      %cst_98 = arith.constant 9.99999996E-13 : f32
      %217 = vector.broadcast %cst_98 : f32 to vector<16x1xf32>
      %218 = arith.addf %214, %217 : vector<16x1xf32>
      %219 = math.rsqrt %218 : vector<16x1xf32>
      %220 = vector.broadcast %219 : vector<16x1xf32> to vector<16x128xf32>
      %221 = arith.mulf %216, %220 : vector<16x128xf32>
      %222 = vector.broadcast %202 : vector<1x128xf32> to vector<16x128xf32>
      %223 = arith.mulf %221, %222 : vector<16x128xf32>
      %224 = vector.broadcast %203 : vector<1x128xf32> to vector<16x128xf32>
      %225 = arith.addf %223, %224 : vector<16x128xf32>
      %226 = vector.shape_cast %225 : vector<16x128xf32> to vector<2x8x128xf32>
      %c0_99 = arith.constant 0 : index
      %c0_100 = arith.constant 0 : index
      %c0_101 = arith.constant 0 : index
      %227 = vector.load %arg20[%c0_99, %c0_100, %c0_101] : memref<2x8x128xf32, #tpu.memory_space<vmem>>, vector<2x8x128xf32>
      tpu.vector_store %arg20[%c0_99, %c0_100, %c0_101], %226 {strides = array<i32>} : memref<2x8x128xf32, #tpu.memory_space<vmem>>, vector<2x8x128xf32>,
      %cst_102 = arith.constant 0.000000e+00 : f32
      %228 = vector.broadcast %cst_102 : f32 to vector<2x8xf32>
      %c0_103 = arith.constant 0 : index
      %c0_104 = arith.constant 0 : index
      %229 = vector.load %arg21[%c0_103, %c0_104] : memref<2x8xf32, #tpu.memory_space<vmem>>, vector<2x8xf32>
      tpu.vector_store %arg21[%c0_103, %c0_104], %228 {strides = array<i32>} : memref<2x8xf32, #tpu.memory_space<vmem>>, vector<2x8xf32>,
    } else {
    }
    %c0 = arith.constant 0 : index
    %c0_1 = arith.constant 0 : index
    %c0_2 = arith.constant 0 : index
    %3 = vector.load %arg20[%c0, %c0_1, %c0_2] : memref<2x8x128xf32, #tpu.memory_space<vmem>>, vector<2x8x128xf32>
    %4 = vector.shape_cast %3 : vector<2x8x128xf32> to vector<16x128xf32>
    %c0_3 = arith.constant 0 : index
    %c0_4 = arith.constant 0 : index
    %c0_5 = arith.constant 0 : index
    %5 = vector.load %arg5[%c0_3, %c0_4, %c0_5] : memref<1x128x384xbf16, #tpu.memory_space<vmem>>, vector<1x128x384xbf16>
    %6 = vector.shape_cast %5 : vector<1x128x384xbf16> to vector<128x384xbf16>
    %c0_6 = arith.constant 0 : index
    %c0_7 = arith.constant 0 : index
    %c0_8 = arith.constant 0 : index
    %7 = vector.load %arg6[%c0_6, %c0_7, %c0_8] : memref<1x1x384xf32, #tpu.memory_space<vmem>>, vector<1x1x384xf32>
    %8 = vector.shape_cast %7 : vector<1x1x384xf32> to vector<1x384xf32>
    %9 = arith.truncf %4 : vector<16x128xf32> to vector<16x128xbf16>
    %cst = arith.constant dense<0.000000e+00> : vector<16x384xf32>
    %10 = tpu.matmul %9, %6, %cst {dimension_numbers = #tpu.dot_dimension_numbers<[1], [0], [0], [1], [0, 0, 1, 1], [], []>} : vector<16x128xbf16>, vector<128x384xbf16>, vector<16x384xf32> -> vector<16x384xf32>
    %11 = vector.broadcast %8 : vector<1x384xf32> to vector<16x384xf32>
    %12 = arith.addf %10, %11 : vector<16x384xf32>
    %13 = vector.extract_strided_slice %12 {offsets = [0, 0], sizes = [16, 128], strides = [1, 1]} : vector<16x384xf32> to vector<16x128xf32>
    %cst_9 = arith.constant 0.176776692 : f32
    %14 = vector.broadcast %cst_9 : f32 to vector<16x128xf32>
    %15 = arith.mulf %13, %14 : vector<16x128xf32>
    %16 = vector.shape_cast %15 : vector<16x128xf32> to vector<2x8x128xf32>
    %17 = arith.truncf %16 : vector<2x8x128xf32> to vector<2x8x128xbf16>
    %18 = vector.extract_strided_slice %12 {offsets = [0, 128], sizes = [16, 128], strides = [1, 1]} : vector<16x384xf32> to vector<16x128xf32>
    %19 = vector.shape_cast %18 : vector<16x128xf32> to vector<2x8x128xf32>
    %20 = arith.truncf %19 : vector<2x8x128xf32> to vector<2x8x128xbf16>
    %21 = vector.extract_strided_slice %12 {offsets = [0, 256], sizes = [16, 128], strides = [1, 1]} : vector<16x384xf32> to vector<16x128xf32>
    %22 = vector.shape_cast %21 : vector<16x128xf32> to vector<2x8x128xf32>
    %23 = arith.truncf %22 : vector<2x8x128xf32> to vector<2x8x128xbf16>
    %c0_10 = arith.constant 0 : index
    %c0_11 = arith.constant 0 : index
    %c0_12 = arith.constant 0 : index
    %24 = vector.load %arg2[%c0_10, %c0_11, %c0_12] : memref<2x8x8xf32, #tpu.memory_space<vmem>>, vector<2x8x8xf32>
    %25 = vector.extract_strided_slice %17 {offsets = [0, 0, 0], sizes = [2, 8, 32], strides = [1, 1, 1]} : vector<2x8x128xbf16> to vector<2x8x32xbf16>
    %26 = vector.extract_strided_slice %20 {offsets = [0, 0, 0], sizes = [2, 8, 32], strides = [1, 1, 1]} : vector<2x8x128xbf16> to vector<2x8x32xbf16>
    %27 = vector.extract_strided_slice %23 {offsets = [0, 0, 0], sizes = [2, 8, 32], strides = [1, 1, 1]} : vector<2x8x128xbf16> to vector<2x8x32xbf16>
    "tpu.trace_start"() <{level = 10 : i32, message = "bqd,bkd->bqk"}> : () -> ()
    %cst_13 = arith.constant dense<0.000000e+00> : vector<2x8x8xf32>
    %28 = tpu.matmul %25, %26, %cst_13 {dimension_numbers = #tpu.dot_dimension_numbers<[2], [2], [1], [1], [0, 0, 0, 1, 1, 1], [0], [0]>} : vector<2x8x32xbf16>, vector<2x8x32xbf16>, vector<2x8x8xf32> -> vector<2x8x8xf32>
    "tpu.trace_stop"() : () -> ()
    %29 = arith.addf %28, %24 : vector<2x8x8xf32>
    %cst_14 = arith.constant dense<0xFF800000> : vector<2x8xf32>
    %30 = vector.multi_reduction <maximumf>, %29, %cst_14 [2] : vector<2x8x8xf32> to vector<2x8xf32>
    %31 = vector.shape_cast %30 : vector<2x8xf32> to vector<2x8x1xf32>
    %32 = vector.broadcast %31 : vector<2x8x1xf32> to vector<2x8x8xf32>
    %33 = arith.subf %29, %32 : vector<2x8x8xf32>
    %34 = math.exp %33 : vector<2x8x8xf32>
    %cst_15 = arith.constant dense<0.000000e+00> : vector<2x8xf32>
    %35 = vector.multi_reduction <add>, %34, %cst_15 [2] : vector<2x8x8xf32> to vector<2x8xf32>
    %36 = vector.shape_cast %35 : vector<2x8xf32> to vector<2x8x1xf32>
    %37 = tpu.reciprocal %36 {approx = true} : vector<2x8x1xf32> -> vector<2x8x1xf32>
    %38 = vector.broadcast %37 : vector<2x8x1xf32> to vector<2x8x8xf32>
    %39 = arith.mulf %34, %38 : vector<2x8x8xf32>
    %40 = arith.truncf %39 : vector<2x8x8xf32> to vector<2x8x8xbf16>
    "tpu.trace_start"() <{level = 10 : i32, message = "bqk,bkd->bqd"}> : () -> ()
    %cst_16 = arith.constant dense<0.000000e+00> : vector<2x8x32xf32>
    %41 = tpu.matmul %40, %27, %cst_16 {dimension_numbers = #tpu.dot_dimension_numbers<[2], [1], [1], [2], [0, 0, 0, 1, 1, 2], [0], [0]>} : vector<2x8x8xbf16>, vector<2x8x32xbf16>, vector<2x8x32xf32> -> vector<2x8x32xf32>
    "tpu.trace_stop"() : () -> ()
    %42 = vector.extract_strided_slice %17 {offsets = [0, 0, 32], sizes = [2, 8, 32], strides = [1, 1, 1]} : vector<2x8x128xbf16> to vector<2x8x32xbf16>
    %43 = vector.extract_strided_slice %20 {offsets = [0, 0, 32], sizes = [2, 8, 32], strides = [1, 1, 1]} : vector<2x8x128xbf16> to vector<2x8x32xbf16>
    %44 = vector.extract_strided_slice %23 {offsets = [0, 0, 32], sizes = [2, 8, 32], strides = [1, 1, 1]} : vector<2x8x128xbf16> to vector<2x8x32xbf16>
    "tpu.trace_start"() <{level = 10 : i32, message = "bqd,bkd->bqk"}> : () -> ()
    %cst_17 = arith.constant dense<0.000000e+00> : vector<2x8x8xf32>
    %45 = tpu.matmul %42, %43, %cst_17 {dimension_numbers = #tpu.dot_dimension_numbers<[2], [2], [1], [1], [0, 0, 0, 1, 1, 1], [0], [0]>} : vector<2x8x32xbf16>, vector<2x8x32xbf16>, vector<2x8x8xf32> -> vector<2x8x8xf32>
    "tpu.trace_stop"() : () -> ()
    %46 = arith.addf %45, %24 : vector<2x8x8xf32>
    %cst_18 = arith.constant dense<0xFF800000> : vector<2x8xf32>
    %47 = vector.multi_reduction <maximumf>, %46, %cst_18 [2] : vector<2x8x8xf32> to vector<2x8xf32>
    %48 = vector.shape_cast %47 : vector<2x8xf32> to vector<2x8x1xf32>
    %49 = vector.broadcast %48 : vector<2x8x1xf32> to vector<2x8x8xf32>
    %50 = arith.subf %46, %49 : vector<2x8x8xf32>
    %51 = math.exp %50 : vector<2x8x8xf32>
    %cst_19 = arith.constant dense<0.000000e+00> : vector<2x8xf32>
    %52 = vector.multi_reduction <add>, %51, %cst_19 [2] : vector<2x8x8xf32> to vector<2x8xf32>
    %53 = vector.shape_cast %52 : vector<2x8xf32> to vector<2x8x1xf32>
    %54 = tpu.reciprocal %53 {approx = true} : vector<2x8x1xf32> -> vector<2x8x1xf32>
    %55 = vector.broadcast %54 : vector<2x8x1xf32> to vector<2x8x8xf32>
    %56 = arith.mulf %51, %55 : vector<2x8x8xf32>
    %57 = arith.truncf %56 : vector<2x8x8xf32> to vector<2x8x8xbf16>
    "tpu.trace_start"() <{level = 10 : i32, message = "bqk,bkd->bqd"}> : () -> ()
    %cst_20 = arith.constant dense<0.000000e+00> : vector<2x8x32xf32>
    %58 = tpu.matmul %57, %44, %cst_20 {dimension_numbers = #tpu.dot_dimension_numbers<[2], [1], [1], [2], [0, 0, 0, 1, 1, 2], [0], [0]>} : vector<2x8x8xbf16>, vector<2x8x32xbf16>, vector<2x8x32xf32> -> vector<2x8x32xf32>
    "tpu.trace_stop"() : () -> ()
    %59 = vector.extract_strided_slice %17 {offsets = [0, 0, 64], sizes = [2, 8, 32], strides = [1, 1, 1]} : vector<2x8x128xbf16> to vector<2x8x32xbf16>
    %60 = vector.extract_strided_slice %20 {offsets = [0, 0, 64], sizes = [2, 8, 32], strides = [1, 1, 1]} : vector<2x8x128xbf16> to vector<2x8x32xbf16>
    %61 = vector.extract_strided_slice %23 {offsets = [0, 0, 64], sizes = [2, 8, 32], strides = [1, 1, 1]} : vector<2x8x128xbf16> to vector<2x8x32xbf16>
    "tpu.trace_start"() <{level = 10 : i32, message = "bqd,bkd->bqk"}> : () -> ()
    %cst_21 = arith.constant dense<0.000000e+00> : vector<2x8x8xf32>
    %62 = tpu.matmul %59, %60, %cst_21 {dimension_numbers = #tpu.dot_dimension_numbers<[2], [2], [1], [1], [0, 0, 0, 1, 1, 1], [0], [0]>} : vector<2x8x32xbf16>, vector<2x8x32xbf16>, vector<2x8x8xf32> -> vector<2x8x8xf32>
    "tpu.trace_stop"() : () -> ()
    %63 = arith.addf %62, %24 : vector<2x8x8xf32>
    %cst_22 = arith.constant dense<0xFF800000> : vector<2x8xf32>
    %64 = vector.multi_reduction <maximumf>, %63, %cst_22 [2] : vector<2x8x8xf32> to vector<2x8xf32>
    %65 = vector.shape_cast %64 : vector<2x8xf32> to vector<2x8x1xf32>
    %66 = vector.broadcast %65 : vector<2x8x1xf32> to vector<2x8x8xf32>
    %67 = arith.subf %63, %66 : vector<2x8x8xf32>
    %68 = math.exp %67 : vector<2x8x8xf32>
    %cst_23 = arith.constant dense<0.000000e+00> : vector<2x8xf32>
    %69 = vector.multi_reduction <add>, %68, %cst_23 [2] : vector<2x8x8xf32> to vector<2x8xf32>
    %70 = vector.shape_cast %69 : vector<2x8xf32> to vector<2x8x1xf32>
    %71 = tpu.reciprocal %70 {approx = true} : vector<2x8x1xf32> -> vector<2x8x1xf32>
    %72 = vector.broadcast %71 : vector<2x8x1xf32> to vector<2x8x8xf32>
    %73 = arith.mulf %68, %72 : vector<2x8x8xf32>
    %74 = arith.truncf %73 : vector<2x8x8xf32> to vector<2x8x8xbf16>
    "tpu.trace_start"() <{level = 10 : i32, message = "bqk,bkd->bqd"}> : () -> ()
    %cst_24 = arith.constant dense<0.000000e+00> : vector<2x8x32xf32>
    %75 = tpu.matmul %74, %61, %cst_24 {dimension_numbers = #tpu.dot_dimension_numbers<[2], [1], [1], [2], [0, 0, 0, 1, 1, 2], [0], [0]>} : vector<2x8x8xbf16>, vector<2x8x32xbf16>, vector<2x8x32xf32> -> vector<2x8x32xf32>
    "tpu.trace_stop"() : () -> ()
    %76 = vector.extract_strided_slice %17 {offsets = [0, 0, 96], sizes = [2, 8, 32], strides = [1, 1, 1]} : vector<2x8x128xbf16> to vector<2x8x32xbf16>
    %77 = vector.extract_strided_slice %20 {offsets = [0, 0, 96], sizes = [2, 8, 32], strides = [1, 1, 1]} : vector<2x8x128xbf16> to vector<2x8x32xbf16>
    %78 = vector.extract_strided_slice %23 {offsets = [0, 0, 96], sizes = [2, 8, 32], strides = [1, 1, 1]} : vector<2x8x128xbf16> to vector<2x8x32xbf16>
    "tpu.trace_start"() <{level = 10 : i32, message = "bqd,bkd->bqk"}> : () -> ()
    %cst_25 = arith.constant dense<0.000000e+00> : vector<2x8x8xf32>
    %79 = tpu.matmul %76, %77, %cst_25 {dimension_numbers = #tpu.dot_dimension_numbers<[2], [2], [1], [1], [0, 0, 0, 1, 1, 1], [0], [0]>} : vector<2x8x32xbf16>, vector<2x8x32xbf16>, vector<2x8x8xf32> -> vector<2x8x8xf32>
    "tpu.trace_stop"() : () -> ()
    %80 = arith.addf %79, %24 : vector<2x8x8xf32>
    %cst_26 = arith.constant dense<0xFF800000> : vector<2x8xf32>
    %81 = vector.multi_reduction <maximumf>, %80, %cst_26 [2] : vector<2x8x8xf32> to vector<2x8xf32>
    %82 = vector.shape_cast %81 : vector<2x8xf32> to vector<2x8x1xf32>
    %83 = vector.broadcast %82 : vector<2x8x1xf32> to vector<2x8x8xf32>
    %84 = arith.subf %80, %83 : vector<2x8x8xf32>
    %85 = math.exp %84 : vector<2x8x8xf32>
    %cst_27 = arith.constant dense<0.000000e+00> : vector<2x8xf32>
    %86 = vector.multi_reduction <add>, %85, %cst_27 [2] : vector<2x8x8xf32> to vector<2x8xf32>
    %87 = vector.shape_cast %86 : vector<2x8xf32> to vector<2x8x1xf32>
    %88 = tpu.reciprocal %87 {approx = true} : vector<2x8x1xf32> -> vector<2x8x1xf32>
    %89 = vector.broadcast %88 : vector<2x8x1xf32> to vector<2x8x8xf32>
    %90 = arith.mulf %85, %89 : vector<2x8x8xf32>
    %91 = arith.truncf %90 : vector<2x8x8xf32> to vector<2x8x8xbf16>
    "tpu.trace_start"() <{level = 10 : i32, message = "bqk,bkd->bqd"}> : () -> ()
    %cst_28 = arith.constant dense<0.000000e+00> : vector<2x8x32xf32>
    %92 = tpu.matmul %91, %78, %cst_28 {dimension_numbers = #tpu.dot_dimension_numbers<[2], [1], [1], [2], [0, 0, 0, 1, 1, 2], [0], [0]>} : vector<2x8x8xbf16>, vector<2x8x32xbf16>, vector<2x8x32xf32> -> vector<2x8x32xf32>
    "tpu.trace_stop"() : () -> ()
    %93 = tpu.concatenate %41, %58, %75, %92 in 2 : vector<2x8x32xf32>, vector<2x8x32xf32>, vector<2x8x32xf32>, vector<2x8x32xf32> -> vector<2x8x128xf32>
    %94 = vector.shape_cast %93 : vector<2x8x128xf32> to vector<16x128xf32>
    %c0_29 = arith.constant 0 : index
    %c0_30 = arith.constant 0 : index
    %c0_31 = arith.constant 0 : index
    %95 = vector.load %arg7[%c0_29, %c0_30, %c0_31] : memref<1x128x128xbf16, #tpu.memory_space<vmem>>, vector<1x128x128xbf16>
    %96 = vector.shape_cast %95 : vector<1x128x128xbf16> to vector<128x128xbf16>
    %c0_32 = arith.constant 0 : index
    %c0_33 = arith.constant 0 : index
    %c0_34 = arith.constant 0 : index
    %97 = vector.load %arg8[%c0_32, %c0_33, %c0_34] : memref<1x1x128xf32, #tpu.memory_space<vmem>>, vector<1x1x128xf32>
    %98 = vector.shape_cast %97 : vector<1x1x128xf32> to vector<1x128xf32>
    %99 = arith.truncf %94 : vector<16x128xf32> to vector<16x128xbf16>
    %cst_35 = arith.constant dense<0.000000e+00> : vector<16x128xf32>
    %100 = tpu.matmul %99, %96, %cst_35 {dimension_numbers = #tpu.dot_dimension_numbers<[1], [0], [0], [1], [0, 0, 1, 1], [], []>} : vector<16x128xbf16>, vector<128x128xbf16>, vector<16x128xf32> -> vector<16x128xf32>
    %101 = vector.broadcast %98 : vector<1x128xf32> to vector<16x128xf32>
    %102 = arith.addf %100, %101 : vector<16x128xf32>
    %103 = arith.addf %102, %4 : vector<16x128xf32>
    %c0_36 = arith.constant 0 : index
    %c0_37 = arith.constant 0 : index
    %c0_38 = arith.constant 0 : index
    %104 = vector.load %arg9[%c0_36, %c0_37, %c0_38] : memref<1x1x128xf32, #tpu.memory_space<vmem>>, vector<1x1x128xf32>
    %105 = vector.shape_cast %104 : vector<1x1x128xf32> to vector<1x128xf32>
    %c0_39 = arith.constant 0 : index
    %c0_40 = arith.constant 0 : index
    %c0_41 = arith.constant 0 : index
    %106 = vector.load %arg10[%c0_39, %c0_40, %c0_41] : memref<1x1x128xf32, #tpu.memory_space<vmem>>, vector<1x1x128xf32>
    %107 = vector.shape_cast %106 : vector<1x1x128xf32> to vector<1x128xf32>
    %cst_42 = arith.constant dense<0.000000e+00> : vector<16xf32>
    %108 = vector.multi_reduction <add>, %103, %cst_42 [1] : vector<16x128xf32> to vector<16xf32>
    %109 = vector.shape_cast %108 : vector<16xf32> to vector<16x1xf32>
    %cst_43 = arith.constant 1.280000e+02 : f32
    %110 = vector.broadcast %cst_43 : f32 to vector<16x1xf32>
    %111 = arith.divf %109, %110 : vector<16x1xf32>
    %112 = vector.broadcast %111 : vector<16x1xf32> to vector<16x128xf32>
    %113 = arith.subf %103, %112 : vector<16x128xf32>
    %114 = arith.mulf %113, %113 : vector<16x128xf32>
    %cst_44 = arith.constant dense<0.000000e+00> : vector<16xf32>
    %115 = vector.multi_reduction <add>, %114, %cst_44 [1] : vector<16x128xf32> to vector<16xf32>
    %116 = vector.shape_cast %115 : vector<16xf32> to vector<16x1xf32>
    %cst_45 = arith.constant 1.280000e+02 : f32
    %117 = vector.broadcast %cst_45 : f32 to vector<16x1xf32>
    %118 = arith.divf %116, %117 : vector<16x1xf32>
    %119 = vector.broadcast %111 : vector<16x1xf32> to vector<16x128xf32>
    %120 = arith.subf %103, %119 : vector<16x128xf32>
    %cst_46 = arith.constant 9.99999996E-13 : f32
    %121 = vector.broadcast %cst_46 : f32 to vector<16x1xf32>
    %122 = arith.addf %118, %121 : vector<16x1xf32>
    %123 = math.rsqrt %122 : vector<16x1xf32>
    %124 = vector.broadcast %123 : vector<16x1xf32> to vector<16x128xf32>
    %125 = arith.mulf %120, %124 : vector<16x128xf32>
    %126 = vector.broadcast %105 : vector<1x128xf32> to vector<16x128xf32>
    %127 = arith.mulf %125, %126 : vector<16x128xf32>
    %128 = vector.broadcast %107 : vector<1x128xf32> to vector<16x128xf32>
    %129 = arith.addf %127, %128 : vector<16x128xf32>
    %c0_47 = arith.constant 0 : index
    %c0_48 = arith.constant 0 : index
    %c0_49 = arith.constant 0 : index
    %130 = vector.load %arg11[%c0_47, %c0_48, %c0_49] : memref<1x128x256xbf16, #tpu.memory_space<vmem>>, vector<1x128x256xbf16>
    %131 = vector.shape_cast %130 : vector<1x128x256xbf16> to vector<128x256xbf16>
    %c0_50 = arith.constant 0 : index
    %c0_51 = arith.constant 0 : index
    %c0_52 = arith.constant 0 : index
    %132 = vector.load %arg12[%c0_50, %c0_51, %c0_52] : memref<1x1x256xf32, #tpu.memory_space<vmem>>, vector<1x1x256xf32>
    %133 = vector.shape_cast %132 : vector<1x1x256xf32> to vector<1x256xf32>
    %134 = arith.truncf %129 : vector<16x128xf32> to vector<16x128xbf16>
    %cst_53 = arith.constant dense<0.000000e+00> : vector<16x256xf32>
    %135 = tpu.matmul %134, %131, %cst_53 {dimension_numbers = #tpu.dot_dimension_numbers<[1], [0], [0], [1], [0, 0, 1, 1], [], []>} : vector<16x128xbf16>, vector<128x256xbf16>, vector<16x256xf32> -> vector<16x256xf32>
    %136 = vector.broadcast %133 : vector<1x256xf32> to vector<16x256xf32>
    %137 = arith.addf %135, %136 : vector<16x256xf32>
    %138 = arith.mulf %137, %137 : vector<16x256xf32>
    %139 = arith.mulf %137, %138 : vector<16x256xf32>
    %cst_54 = arith.constant 4.471500e-02 : f32
    %140 = vector.broadcast %cst_54 : f32 to vector<16x256xf32>
    %141 = arith.mulf %140, %139 : vector<16x256xf32>
    %142 = arith.addf %137, %141 : vector<16x256xf32>
    %cst_55 = arith.constant 0.797884583 : f32
    %143 = vector.broadcast %cst_55 : f32 to vector<16x256xf32>
    %144 = arith.mulf %143, %142 : vector<16x256xf32>
    %145 = math.tanh %144 : vector<16x256xf32>
    %cst_56 = arith.constant 1.000000e+00 : f32
    %146 = vector.broadcast %cst_56 : f32 to vector<16x256xf32>
    %147 = arith.addf %146, %145 : vector<16x256xf32>
    %cst_57 = arith.constant 5.000000e-01 : f32
    %148 = vector.broadcast %cst_57 : f32 to vector<16x256xf32>
    %149 = arith.mulf %148, %147 : vector<16x256xf32>
    %150 = arith.mulf %137, %149 : vector<16x256xf32>
    %c0_58 = arith.constant 0 : index
    %c0_59 = arith.constant 0 : index
    %c0_60 = arith.constant 0 : index
    %151 = vector.load %arg13[%c0_58, %c0_59, %c0_60] : memref<1x256x128xbf16, #tpu.memory_space<vmem>>, vector<1x256x128xbf16>
    %152 = vector.shape_cast %151 : vector<1x256x128xbf16> to vector<256x128xbf16>
    %c0_61 = arith.constant 0 : index
    %c0_62 = arith.constant 0 : index
    %c0_63 = arith.constant 0 : index
    %153 = vector.load %arg14[%c0_61, %c0_62, %c0_63] : memref<1x1x128xf32, #tpu.memory_space<vmem>>, vector<1x1x128xf32>
    %154 = vector.shape_cast %153 : vector<1x1x128xf32> to vector<1x128xf32>
    %155 = arith.truncf %150 : vector<16x256xf32> to vector<16x256xbf16>
    %cst_64 = arith.constant dense<0.000000e+00> : vector<16x128xf32>
    %156 = tpu.matmul %155, %152, %cst_64 {dimension_numbers = #tpu.dot_dimension_numbers<[1], [0], [0], [1], [0, 0, 1, 1], [], []>} : vector<16x256xbf16>, vector<256x128xbf16>, vector<16x128xf32> -> vector<16x128xf32>
    %157 = vector.broadcast %154 : vector<1x128xf32> to vector<16x128xf32>
    %158 = arith.addf %156, %157 : vector<16x128xf32>
    %159 = arith.addf %158, %129 : vector<16x128xf32>
    %c0_65 = arith.constant 0 : index
    %c0_66 = arith.constant 0 : index
    %c0_67 = arith.constant 0 : index
    %160 = vector.load %arg15[%c0_65, %c0_66, %c0_67] : memref<1x1x128xf32, #tpu.memory_space<vmem>>, vector<1x1x128xf32>
    %161 = vector.shape_cast %160 : vector<1x1x128xf32> to vector<1x128xf32>
    %c0_68 = arith.constant 0 : index
    %c0_69 = arith.constant 0 : index
    %c0_70 = arith.constant 0 : index
    %162 = vector.load %arg16[%c0_68, %c0_69, %c0_70] : memref<1x1x128xf32, #tpu.memory_space<vmem>>, vector<1x1x128xf32>
    %163 = vector.shape_cast %162 : vector<1x1x128xf32> to vector<1x128xf32>
    %cst_71 = arith.constant dense<0.000000e+00> : vector<16xf32>
    %164 = vector.multi_reduction <add>, %159, %cst_71 [1] : vector<16x128xf32> to vector<16xf32>
    %165 = vector.shape_cast %164 : vector<16xf32> to vector<16x1xf32>
    %cst_72 = arith.constant 1.280000e+02 : f32
    %166 = vector.broadcast %cst_72 : f32 to vector<16x1xf32>
    %167 = arith.divf %165, %166 : vector<16x1xf32>
    %168 = vector.broadcast %167 : vector<16x1xf32> to vector<16x128xf32>
    %169 = arith.subf %159, %168 : vector<16x128xf32>
    %170 = arith.mulf %169, %169 : vector<16x128xf32>
    %cst_73 = arith.constant dense<0.000000e+00> : vector<16xf32>
    %171 = vector.multi_reduction <add>, %170, %cst_73 [1] : vector<16x128xf32> to vector<16xf32>
    %172 = vector.shape_cast %171 : vector<16xf32> to vector<16x1xf32>
    %cst_74 = arith.constant 1.280000e+02 : f32
    %173 = vector.broadcast %cst_74 : f32 to vector<16x1xf32>
    %174 = arith.divf %172, %173 : vector<16x1xf32>
    %175 = vector.broadcast %167 : vector<16x1xf32> to vector<16x128xf32>
    %176 = arith.subf %159, %175 : vector<16x128xf32>
    %cst_75 = arith.constant 9.99999996E-13 : f32
    %177 = vector.broadcast %cst_75 : f32 to vector<16x1xf32>
    %178 = arith.addf %174, %177 : vector<16x1xf32>
    %179 = math.rsqrt %178 : vector<16x1xf32>
    %180 = vector.broadcast %179 : vector<16x1xf32> to vector<16x128xf32>
    %181 = arith.mulf %176, %180 : vector<16x128xf32>
    %182 = vector.broadcast %161 : vector<1x128xf32> to vector<16x128xf32>
    %183 = arith.mulf %181, %182 : vector<16x128xf32>
    %184 = vector.broadcast %163 : vector<1x128xf32> to vector<16x128xf32>
    %185 = arith.addf %183, %184 : vector<16x128xf32>
    %186 = vector.shape_cast %185 : vector<16x128xf32> to vector<2x8x128xf32>
    %c0_76 = arith.constant 0 : index
    %c0_77 = arith.constant 0 : index
    %c0_78 = arith.constant 0 : index
    %187 = vector.load %arg20[%c0_76, %c0_77, %c0_78] : memref<2x8x128xf32, #tpu.memory_space<vmem>>, vector<2x8x128xf32>
    tpu.vector_store %arg20[%c0_76, %c0_77, %c0_78], %186 {strides = array<i32>} : memref<2x8x128xf32, #tpu.memory_space<vmem>>, vector<2x8x128xf32>,
    %188 = vector.shape_cast %185 : vector<16x128xf32> to vector<2x8x128xf32>
    %189 = vector.extract_strided_slice %188 {offsets = [0, 0, 0], sizes = [2, 1, 128], strides = [1, 1, 1]} : vector<2x8x128xf32> to vector<2x1x128xf32>
    %190 = vector.shape_cast %189 : vector<2x1x128xf32> to vector<2x128xf32>
    %c0_79 = arith.constant 0 : index
    %c0_80 = arith.constant 0 : index
    %191 = vector.load %arg21[%c0_79, %c0_80] : memref<2x8xf32, #tpu.memory_space<vmem>>, vector<2x8xf32>
    %192 = arith.truncf %190 : vector<2x128xf32> to vector<2x128xbf16>
    %c0_81 = arith.constant 0 : index
    %c0_82 = arith.constant 0 : index
    %193 = vector.load %arg17[%c0_81, %c0_82] : memref<128x8xbf16, #tpu.memory_space<vmem>>, vector<128x8xbf16>
    %cst_83 = arith.constant dense<0.000000e+00> : vector<2x8xf32>
    %194 = tpu.matmul %192, %193, %cst_83 {dimension_numbers = #tpu.dot_dimension_numbers<[1], [0], [0], [1], [0, 0, 1, 1], [], []>} : vector<2x128xbf16>, vector<128x8xbf16>, vector<2x8xf32> -> vector<2x8xf32>
    %195 = arith.addf %191, %194 : vector<2x8xf32>
    %c0_84 = arith.constant 0 : index
    %c0_85 = arith.constant 0 : index
    %196 = vector.load %arg21[%c0_84, %c0_85] : memref<2x8xf32, #tpu.memory_space<vmem>>, vector<2x8xf32>
    tpu.vector_store %arg21[%c0_84, %c0_85], %195 {strides = array<i32>} : memref<2x8xf32, #tpu.memory_space<vmem>>, vector<2x8xf32>,
    %c3_i32 = arith.constant 3 : i32
    %197 = arith.cmpi eq, %arg0, %c3_i32 : i32
    %198 = arith.extui %197 : i1 to i32
    %c0_i32_86 = arith.constant 0 : i32
    %199 = arith.cmpi ne, %198, %c0_i32_86 : i32
    scf.if %199 {
      %c0_87 = arith.constant 0 : index
      %c0_88 = arith.constant 0 : index
      %200 = vector.load %arg21[%c0_87, %c0_88] : memref<2x8xf32, #tpu.memory_space<vmem>>, vector<2x8xf32>
      %c0_89 = arith.constant 0 : index
      %c0_90 = arith.constant 0 : index
      %201 = vector.load %arg18[%c0_89, %c0_90] : memref<1x8xf32, #tpu.memory_space<vmem>>, vector<1x8xf32>
      %202 = vector.broadcast %201 : vector<1x8xf32> to vector<2x8xf32>
      %203 = arith.addf %200, %202 : vector<2x8xf32>
      %c0_91 = arith.constant 0 : index
      %c0_92 = arith.constant 0 : index
      %204 = vector.load %arg19[%c0_91, %c0_92] : memref<2x8xf32, #tpu.memory_space<vmem>>, vector<2x8xf32>
      tpu.vector_store %arg19[%c0_91, %c0_92], %203 {strides = array<i32>} : memref<2x8xf32, #tpu.memory_space<vmem>>, vector<2x8xf32>,
    } else {
    }
    return
  }
  func.func @transform_0(%arg0: i32) -> (i32, i32, i32) {
    %c0_i32 = arith.constant 0 : i32
    %c0_i32_0 = arith.constant 0 : i32
    %c0_i32_1 = arith.constant 0 : i32
    %c0_i32_2 = arith.constant 0 : i32
    return %c0_i32, %c0_i32_0, %c0_i32_1 : i32, i32, i32
  }
  func.func @transform_1(%arg0: i32) -> (i32, i32, i32) {
    %c0_i32 = arith.constant 0 : i32
    %c0_i32_0 = arith.constant 0 : i32
    %c0_i32_1 = arith.constant 0 : i32
    %c0_i32_2 = arith.constant 0 : i32
    return %c0_i32, %c0_i32_0, %c0_i32_1 : i32, i32, i32
  }
  func.func @transform_2(%arg0: i32) -> (i32, i32) {
    %c0_i32 = arith.constant 0 : i32
    %c0_i32_0 = arith.constant 0 : i32
    %c0_i32_1 = arith.constant 0 : i32
    return %c0_i32, %c0_i32_0 : i32, i32
  }
  func.func @transform_3(%arg0: i32) -> (i32, i32) {
    %c0_i32 = arith.constant 0 : i32
    %c0_i32_0 = arith.constant 0 : i32
    %c0_i32_1 = arith.constant 0 : i32
    return %c0_i32, %c0_i32_0 : i32, i32
  }
  func.func @transform_4(%arg0: i32) -> (i32, i32, i32) {
    %c0_i32 = arith.constant 0 : i32
    %c0_i32_0 = arith.constant 0 : i32
    %c0_i32_1 = arith.constant 0 : i32
    return %arg0, %c0_i32, %c0_i32_0 : i32, i32, i32
  }
  func.func @transform_5(%arg0: i32) -> (i32, i32, i32) {
    %c0_i32 = arith.constant 0 : i32
    %c0_i32_0 = arith.constant 0 : i32
    %c0_i32_1 = arith.constant 0 : i32
    return %arg0, %c0_i32, %c0_i32_0 : i32, i32, i32
  }
  func.func @transform_6(%arg0: i32) -> (i32, i32, i32) {
    %c0_i32 = arith.constant 0 : i32
    %c0_i32_0 = arith.constant 0 : i32
    %c0_i32_1 = arith.constant 0 : i32
    return %arg0, %c0_i32, %c0_i32_0 : i32, i32, i32
  }
  func.func @transform_7(%arg0: i32) -> (i32, i32, i32) {
    %c0_i32 = arith.constant 0 : i32
    %c0_i32_0 = arith.constant 0 : i32
    %c0_i32_1 = arith.constant 0 : i32
    return %arg0, %c0_i32, %c0_i32_0 : i32, i32, i32
  }
  func.func @transform_8(%arg0: i32) -> (i32, i32, i32) {
    %c0_i32 = arith.constant 0 : i32
    %c0_i32_0 = arith.constant 0 : i32
    %c0_i32_1 = arith.constant 0 : i32
    return %arg0, %c0_i32, %c0_i32_0 : i32, i32, i32
  }
  func.func @transform_9(%arg0: i32) -> (i32, i32, i32) {
    %c0_i32 = arith.constant 0 : i32
    %c0_i32_0 = arith.constant 0 : i32
    %c0_i32_1 = arith.constant 0 : i32
    return %arg0, %c0_i32, %c0_i32_0 : i32, i32, i32
  }
  func.func @transform_10(%arg0: i32) -> (i32, i32, i32) {
    %c0_i32 = arith.constant 0 : i32
    %c0_i32_0 = arith.constant 0 : i32
    %c0_i32_1 = arith.constant 0 : i32
    return %arg0, %c0_i32, %c0_i32_0 : i32, i32, i32
  }
  func.func @transform_11(%arg0: i32) -> (i32, i32, i32) {
    %c0_i32 = arith.constant 0 : i32
    %c0_i32_0 = arith.constant 0 : i32
    %c0_i32_1 = arith.constant 0 : i32
    return %arg0, %c0_i32, %c0_i32_0 : i32, i32, i32
  }
  func.func @transform_12(%arg0: i32) -> (i32, i32, i32) {
    %c0_i32 = arith.constant 0 : i32
    %c0_i32_0 = arith.constant 0 : i32
    %c0_i32_1 = arith.constant 0 : i32
    return %arg0, %c0_i32, %c0_i32_0 : i32, i32, i32
  }
  func.func @transform_13(%arg0: i32) -> (i32, i32, i32) {
    %c0_i32 = arith.constant 0 : i32
    %c0_i32_0 = arith.constant 0 : i32
    %c0_i32_1 = arith.constant 0 : i32
    return %arg0, %c0_i32, %c0_i32_0 : i32, i32, i32
  }
  func.func @transform_14(%arg0: i32) -> (i32, i32, i32) {
    %c0_i32 = arith.constant 0 : i32
    %c0_i32_0 = arith.constant 0 : i32
    %c0_i32_1 = arith.constant 0 : i32
    return %arg0, %c0_i32, %c0_i32_0 : i32, i32, i32
  }
  func.func @transform_15(%arg0: i32) -> (i32, i32, i32) {
    %c0_i32 = arith.constant 0 : i32
    %c0_i32_0 = arith.constant 0 : i32
    %c0_i32_1 = arith.constant 0 : i32
    return %arg0, %c0_i32, %c0_i32_0 : i32, i32, i32
  }
  func.func @transform_16(%arg0: i32) -> (i32, i32) {
    %c3_i32 = arith.constant 3 : i32
    %0 = arith.subi %c3_i32, %arg0 : i32
    %c0_i32 = arith.constant 0 : i32
    %c0_i32_0 = arith.constant 0 : i32
    return %0, %c0_i32 : i32, i32
  }
  func.func @transform_17(%arg0: i32) -> (i32, i32) {
    %c0_i32 = arith.constant 0 : i32
    %c0_i32_0 = arith.constant 0 : i32
    %c0_i32_1 = arith.constant 0 : i32
    return %c0_i32, %c0_i32_0 : i32, i32
  }
  func.func @transform_18(%arg0: i32) -> (i32, i32) {
    %c0_i32 = arith.constant 0 : i32
    %c0_i32_0 = arith.constant 0 : i32
    %c0_i32_1 = arith.constant 0 : i32
    return %c0_i32, %c0_i32_0 : i32, i32
  }
}

</mosaic_0001>

<bundles_post_ra>
// kernel: fin_forward.1
= control target key start
LH: loop header
LB: loop body
LE: loop exit
PB: predicated region body
PF: predicated region fallthrough
CT: control target
= control target key end

     0   :  { %s4386_s0 = inlined_call_operand.vmem [shape: f32[2,8,128], index: 0, kind: input, shape index: {}]   ;;  %s4387_s1 = inlined_call_operand.vmem [shape: f32[2,8,8], index: 1, kind: input, shape index: {}]   ;;  %s4388_s2 = inlined_call_operand.hbm [shape: f32[1,128], index: 2, kind: input, shape index: {}]   ;;  %s4389_s3 = inlined_call_operand.hbm [shape: f32[1,128], index: 3, kind: input, shape index: {}]   ;;  %s4390_s4 = inlined_call_operand.hbm [shape: bf16[4,128,384], index: 4, kind: input, shape index: {}]   ;;  %s4391_s5 = inlined_call_operand.vmem [shape: f32[4,1,384], index: 5, kind: input, shape index: {}]   ;;  %s4392_s6 = inlined_call_operand.vmem [shape: bf16[4,128,128], index: 6, kind: input, shape index: {}]   ;;  %s4393_s7 = inlined_call_operand.hbm [shape: f32[4,1,128], index: 7, kind: input, shape index: {}]   ;;  %s4394_s8 = inlined_call_operand.vmem [shape: f32[4,1,128], index: 8, kind: input, shape index: {}]   ;;  %s4395_s9 = inlined_call_operand.hbm [shape: f32[4,1,128], index: 9, kind: input, shape index: {}]   ;;  %s4396_s10 = inlined_call_operand.vmem [shape: bf16[4,128,256], index: 10, kind: input, shape index: {}]   ;;  %s4397_s11 = inlined_call_operand.hbm [shape: f32[4,1,256], index: 11, kind: input, shape index: {}]   ;;  %s4398_s12 = inlined_call_operand.hbm [shape: bf16[4,256,128], index: 12, kind: input, shape index: {}]   ;;  %s4399_s13 = inlined_call_operand.hbm [shape: f32[4,1,128], index: 13, kind: input, shape index: {}]   ;;  %s4400_s14 = inlined_call_operand.hbm [shape: f32[4,1,128], index: 14, kind: input, shape index: {}]   ;;  %s4401_s15 = inlined_call_operand.hbm [shape: f32[4,1,128], index: 15, kind: input, shape index: {}]   ;;  %s4402_s16 = inlined_call_operand.vmem [shape: bf16[512,8], index: 16, kind: input, shape index: {}]   ;;  %s4403_s17 = inlined_call_operand.hbm [shape: f32[1,8], index: 17, kind: input, shape index: {}]   ;;  %s4404_s18 = inlined_call_operand.hbm [shape: f32[2,8], index: 18, kind: output, shape index: {}]  }
   0x1   :  { %4415 = sst [smem:[#allocation30_spill]] %s4386_s0 }
   0x2   :  { %4416 = sst [smem:[#allocation31_spill]] %s4387_s1 }
   0x3   :  { %4417 = sst [smem:[#allocation32_spill]] %s4388_s2 }
   0x4   :  { %4418 = sst [smem:[#allocation33_spill]] %s4389_s3 }
   0x5   :  { %4419 = sst [smem:[#allocation34_spill]] %s4390_s4 }
   0x6   :  { %4420 = sst [smem:[#allocation35_spill]] %s4391_s5 }
   0x7   :  { %4421 = sst [smem:[#allocation36_spill]] %s4392_s6 }
   0x8   :  { %4422 = sst [smem:[#allocation37_spill]] %s4393_s7 }
   0x9   :  { %4423 = sst [smem:[#allocation38_spill]] %s4394_s8 }
   0xa   :  { %4424 = sst [smem:[#allocation39_spill]] %s4395_s9 }
   0xb   :  { %4425 = sst [smem:[#allocation40_spill]] %s4396_s10 }
   0xc   :  { %4426 = sst [smem:[#allocation41_spill]] %s4397_s11 }
   0xd   :  { %4427 = sst [smem:[#allocation42_spill]] %s4398_s12 }
   0xe   :  { %4428 = sst [smem:[#allocation43_spill]] %s4402_s16 }
   0xf   :  { %4429 = sst [smem:[#allocation44_spill]] %s4404_s18 }
  0x10   :  { %23 = vsyncpa [#allocation5], 0 }
  0x11   :  { %24 = vsyncpa [#allocation8], 0 }
  0x12   :  { %25 = vsyncpa [#allocation6], 0  ;;  %s3772_s27 = smov 0   ;;  %s3774_s28 = smov 0  }
  0x13   :  { %s3776_s29 = smov 0   ;;  %s3778_s30 = smov 0  }
  0x14 LB: > { %4430 = sst [smem:[#allocation24_spill]] %s3653_s28  ;;  %s3791_s0 = sadd.s32 4294967295, %s3661_s30   ;;  %s3661_s30 = sphi %s3778_s30, %s4468_s30   ;;  %s3657_s29 = sphi %s3776_s29, %s4471_s29   ;;  %s3653_s28 = sphi %s3774_s28, %s4470_s28   ;;  %s3649_s27 = sphi %s3772_s27, %s4469_s27  }
  0x15   : > { %4431 = sst [smem:[#allocation25_spill]] %s3657_s29  ;;  %s3794_s19 = sadd.s32 1, %s3661_s30  }
  0x16   : > { %4432 = sst [smem:[#allocation26_spill]] %s3791_s0  ;;  %s119_s1 = ssub.s32 %s3661_s30, %s3794_s19 }
  0x17   : > { %4433 = sst [smem:[#allocation27_spill]] %s3794_s19  ;;  %s122_s20 = sadd.s32 1, %s3657_s29 }
  0x18   : > { %p120_p0 = scmp.eq.s32.totalorder %s119_s1, 0  ;;  %p129_p1 = scmp.ne.s32.totalorder %s3657_s29, %s3653_s28 }
  0x19   : > { %p130_p2 = scmp.eq.s32.totalorder %s3661_s30, 0  ;;  %p135_p3 = scmp.ne.s32.totalorder %s3653_s28, %s3649_s27 }
  0x1a   : > { %s3804_s21 = scalar_select %p120_p0, %s3657_s29, %s122_s20  }
  0x1b   : > { %p3806_p4 = por %p130_p2, %p129_p1  ;;  %p136_p5 = scmp.eq.s32.totalorder %s3791_s0, 0 }
  0x1c   : > { %4434 = sst [smem:[#allocation28_spill]] %s3804_s21  ;;  %p2639_p6 = scmp.ge.s32.totalorder %s3661_s30, 1 }
  0x1d   : > { %p502_p7 = scmp.lt.s32.totalorder %s3661_s30, 5  ;;  %p3815_p8 = por %p136_p5, %p135_p3 }
  0x1e   : > { %p2640_p9 = scmp.ne.s32.totalorder %s3791_s0, 0  ;;  %s4439_s26 = sld [smem:[#allocation32_spill]] }
  0x1f   : > { %s4436_s2 = scalar_select %p3815_p8, 1, 0 }
  0x20   : > { %p3820_p10 = pnand %p2639_p6, %p502_p7  ;;  %s3663_s1 = smov [#allocation4]  }
  0x21   : > { %4437 = sst [smem:[#allocation29_spill]] %s4436_s2  ;;  %s522_s20 = sshll.u32 %s3663_s1, 4  ;;  %s523_s20 = int_to_ptr.vmem [resolvable:$true] %s522_s20 }
  0x22   : > { %p3083_p11 = pneg %p3820_p10  ;;  %p3121_p13 = scmp.lt.s32.totalorder %s3661_s30, 4 }
  0x23   : > { %s3837_s19 = sand.u32 1, %s3657_s29   ;;  %s557_s24 = sand.u32 1, %s3661_s30  }
  0x24   : > { %s520_s27 = sshll.u32 %s4439_s26, 4  ;;  %p3831_p12 = pnand %p3083_p11, %p136_p5  ;;  %s521_s27 = int_to_ptr.hbm [resolvable:$true] %s520_s27 }
  0x25   : > { %p3842_p0 = pnand %p3121_p13, %p3806_p4  ;;  %s3047_s26 = smul.u32 192, %s3837_s19 }
  0x26   : > { %3086 = dma.hbm_to_vmem [thread:$0]  (!%p3831_p12), %s521_s27, 16, %s523_s20, [#allocation5]  }
  0x27   : > { %s3048_s1 = smul.u32 192, %s3661_s30  ;;  %s4442_s4 = sld [smem:[#allocation34_spill]] }
  0x28   : > { %s561_s5 = scalar_lea.vmem [#allocation9], %s3047_s26  ;;  %s4443_s7 = sld [smem:[#allocation37_spill]] }
  0x29   : > { %s569_s8 = sshll.u32 %s561_s5, 4  ;;  %s3857_s28 = scalar_lea.sflag [#allocation5], %s557_s24  ;;  %s570_s8 = int_to_ptr.vmem [resolvable:$true] %s569_s8 }
  0x2a   : > { %p3861_p2 = pneg %p3842_p0 }
  0x2d   : > { %s566_s10 = scalar_lea.hbm %s4442_s4, %s3048_s1  ;;  %s3290_s6 = scalar_lea.hbm %s4442_s4, 768 }
  0x2e   : > { %s567_s29 = sshll.u32 %s566_s10, 4  ;;  %s600_s2 = scalar_lea.hbm %s4443_s7, %s3661_s30  ;;  %s568_s29 = int_to_ptr.hbm [resolvable:$true] %s567_s29 }
  0x2f   : > { %s3283_s0 = sshra.s32 %s568_s29, 4  ;;  %s3284_s0 = int_to_ptr.hbm [resolvable:$true] %s3283_s0 }
  0x30   : > { %s3285_s27 = scalar_lea.hbm %s3284_s0, 192  ;;  %p3291_p6 = scmp.lt.s32.totalorder %s3284_s0, %s4442_s4 }
  0x31   : > { %p3286_p1 = scmp.ne.s32.totalorder %s3284_s0, %s3285_s27  ;;  %p3292_p7 = scmp.lt.s32.totalorder %s3290_s6, %s3285_s27 }
  0x33   : > { %p3288_p3 = pnand %p3861_p2, %p3286_p1  ;;  %p3293_p11 = por %p3292_p7, %p3291_p6 }
  0x35   : > { %p3289_p4 = pneg %p3288_p3 }
  0x37   : > { %p3294_p13 = pnand %p3293_p11, %p3289_p4 }
  0x39   : > { %3297 = shalt.err (!%p3294_p13)
}
  0x3a   : > { %s3664_s24 = smov 192   ;;  %s3665_s26 = smov 12  }
  0x3b   : > { %3096 = dma.hbm_to_vmem [thread:$0]  (!%p3842_p0), %s568_s29, 3072, %s570_s8, %s3857_s28, %s3664_s24, %s3664_s24, %s3665_s26  }
  0x3c   : > { %s602_s1 = sshll.u32 %s600_s2, 4  ;;  %s597_s22 = scalar_lea.vmem [#allocation10], %s3837_s19  ;;  %s603_s1 = int_to_ptr.hbm [resolvable:$true] %s602_s1 }
  0x3d   : > { %s604_s5 = sshll.u32 %s597_s22, 4  ;;  %s3313_s10 = sshra.s32 %s603_s1, 4  ;;  %s605_s5 = int_to_ptr.vmem [resolvable:$true] %s604_s5  ;;  %s3314_s10 = int_to_ptr.hbm [resolvable:$true] %s3313_s10 }
  0x3e   : > { %s3315_s0 = scalar_lea.hbm %s3314_s10, 1  ;;  %s3320_s16 = scalar_lea.hbm %s4443_s7, 4 }
  0x3f   : > { %p3316_p1 = scmp.ne.s32.totalorder %s3314_s10, %s3315_s0  ;;  %p3321_p6 = scmp.lt.s32.totalorder %s3314_s10, %s4443_s7 }
  0x40   : > { %p3322_p7 = scmp.lt.s32.totalorder %s3320_s16, %s3315_s0 }
  0x41   : > { %p3318_p3 = pnand %p3316_p1, %p3861_p2 }
  0x42   : > { %p3323_p11 = por %p3322_p7, %p3321_p6 }
  0x43   : > { %p3319_p4 = pneg %p3318_p3 }
  0x45   : > { %p3324_p13 = pnand %p3323_p11, %p3319_p4 }
  0x47   : > { %3327 = shalt.err (!%p3324_p13)
}
  0x48   : > { %3099 = dma.hbm_to_vmem [thread:$0]  (!%p3842_p0), %s603_s1, 16, %s605_s5, %s3857_s28  }
  0x49   : > { %s4445_s9 = sld [smem:[#allocation39_spill]]  ;;  %s620_s26 = scalar_lea.vmem [#allocation11], %s3837_s19 }
  0x4a   : > { %s627_s22 = sshll.u32 %s620_s26, 4  ;;  %s628_s22 = int_to_ptr.vmem [resolvable:$true] %s627_s22 }
  0x4f   : > { %s623_s2 = scalar_lea.hbm %s4445_s9, %s3661_s30  ;;  %s3350_s1 = scalar_lea.hbm %s4445_s9, 4 }
  0x50   : > { %s625_s24 = sshll.u32 %s623_s2, 4  ;;  %s626_s24 = int_to_ptr.hbm [resolvable:$true] %s625_s24 }
  0x51   : > { %s3343_s4 = sshra.s32 %s626_s24, 4  ;;  %s3344_s4 = int_to_ptr.hbm [resolvable:$true] %s3343_s4 }
  0x52   : > { %s3345_s10 = scalar_lea.hbm %s3344_s4, 1  ;;  %p3351_p6 = scmp.lt.s32.totalorder %s3344_s4, %s4445_s9 }
  0x53   : > { %p3346_p1 = scmp.ne.s32.totalorder %s3344_s4, %s3345_s10  ;;  %p3352_p7 = scmp.lt.s32.totalorder %s3350_s1, %s3345_s10 }
  0x55   : > { %p3348_p3 = pnand %p3346_p1, %p3861_p2  ;;  %p3353_p11 = por %p3352_p7, %p3351_p6 }
  0x57   : > { %p3349_p4 = pneg %p3348_p3 }
  0x59   : > { %p3354_p13 = pnand %p3353_p11, %p3349_p4 }
  0x5b   : > { %3357 = shalt.err (!%p3354_p13)
}
  0x5c   : > { %3102 = dma.hbm_to_vmem [thread:$0]  (!%p3842_p0), %s626_s24, 16, %s628_s22, %s3857_s28  }
  0x5d   : > { %s2645_s16 = sshll.u32 %s3837_s19, 1  ;;  %s2646_s18 = sshll.u32 %s3661_s30, 1 }
  0x5e   : > { %s4446_s11 = sld [smem:[#allocation41_spill]]  ;;  %s646_s0 = scalar_lea.vmem [#allocation12], %s2645_s16 }
  0x5f   : > { %s654_s4 = sshll.u32 %s646_s0, 4  ;;  %s655_s4 = int_to_ptr.vmem [resolvable:$true] %s654_s4 }
  0x64   : > { %s650_s2 = scalar_lea.hbm %s4446_s11, %s2646_s18  ;;  %s3380_s22 = scalar_lea.hbm %s4446_s11, 8 }
  0x65   : > { %s652_s26 = sshll.u32 %s650_s2, 4  ;;  %s653_s26 = int_to_ptr.hbm [resolvable:$true] %s652_s26 }
  0x66   : > { %s3373_s10 = sshra.s32 %s653_s26, 4  ;;  %s3374_s10 = int_to_ptr.hbm [resolvable:$true] %s3373_s10 }
  0x67   : > { %s3375_s27 = scalar_lea.hbm %s3374_s10, 2  ;;  %p3381_p6 = scmp.lt.s32.totalorder %s3374_s10, %s4446_s11 }
  0x68   : > { %p3376_p1 = scmp.ne.s32.totalorder %s3374_s10, %s3375_s27  ;;  %p3382_p7 = scmp.lt.s32.totalorder %s3380_s22, %s3375_s27 }
  0x6a   : > { %p3378_p3 = pnand %p3376_p1, %p3861_p2  ;;  %p3383_p11 = por %p3382_p7, %p3381_p6 }
  0x6c   : > { %p3379_p4 = pneg %p3378_p3 }
  0x6e   : > { %p3384_p13 = pnand %p3383_p11, %p3379_p4 }
  0x70   : > { %3387 = shalt.err (!%p3384_p13)
}
  0x71   : > { %3105 = dma.hbm_to_vmem [thread:$0]  (!%p3842_p0), %s653_s26, 32, %s655_s4, %s3857_s28  }
  0x72   : > { %s2647_s16 = sshll.u32 %s3837_s19, 7  ;;  %s2972_s18 = sshll.u32 %s3661_s30, 7 }
  0x73   : > { %s4447_s12 = sld [smem:[#allocation42_spill]]  ;;  %s665_s1 = scalar_lea.vmem [#allocation13], %s2647_s16 }
  0x74   : > { %s673_s10 = sshll.u32 %s665_s1, 4  ;;  %s674_s10 = int_to_ptr.vmem [resolvable:$true] %s673_s10 }
  0x79   : > { %s670_s2 = scalar_lea.hbm %s4447_s12, %s2972_s18  ;;  %s3410_s4 = scalar_lea.hbm %s4447_s12, 512 }
  0x7a   : > { %s671_s0 = sshll.u32 %s670_s2, 4  ;;  %s672_s0 = int_to_ptr.hbm [resolvable:$true] %s671_s0 }
  0x7b   : > { %s3403_s27 = sshra.s32 %s672_s0, 4  ;;  %s3404_s27 = int_to_ptr.hbm [resolvable:$true] %s3403_s27 }
  0x7c   : > { %s3405_s24 = scalar_lea.hbm %s3404_s27, 128  ;;  %p3411_p6 = scmp.lt.s32.totalorder %s3404_s27, %s4447_s12 }
  0x7d   : > { %p3406_p1 = scmp.ne.s32.totalorder %s3404_s27, %s3405_s24  ;;  %p3412_p7 = scmp.lt.s32.totalorder %s3410_s4, %s3405_s24 }
  0x7f   : > { %p3408_p3 = pnand %p3406_p1, %p3861_p2  ;;  %p3413_p11 = por %p3412_p7, %p3411_p6 }
  0x81   : > { %p3409_p4 = pneg %p3408_p3 }
  0x83   : > { %p3414_p13 = pnand %p3413_p11, %p3409_p4 }
  0x85   : > { %3417 = shalt.err (!%p3414_p13)
}
  0x86   : > { %s3666_s16 = smov 64   ;;  %s3667_s18 = smov 4  }
  0x87   : > { %3108 = dma.hbm_to_vmem [thread:$0]  (!%p3842_p0), %s672_s0, 2048, %s674_s10, %s3857_s28, %s3666_s16, %s3666_s16, %s3667_s18  }
  0x88   : > { %s689_s2 = scalar_lea.hbm %s4399_s13, %s3661_s30  ;;  %s686_s22 = scalar_lea.vmem [#allocation14], %s3837_s19 }
  0x89   : > { %s691_s1 = sshll.u32 %s689_s2, 4  ;;  %s693_s27 = sshll.u32 %s686_s22, 4  ;;  %s692_s1 = int_to_ptr.hbm [resolvable:$true] %s691_s1  ;;  %s694_s27 = int_to_ptr.vmem [resolvable:$true] %s693_s27 }
  0x8a   : > { %s3433_s24 = sshra.s32 %s692_s1, 4  ;;  %s3440_s0 = scalar_lea.hbm %s4399_s13, 4  ;;  %s3434_s24 = int_to_ptr.hbm [resolvable:$true] %s3433_s24 }
  0x8b   : > { %s3435_s26 = scalar_lea.hbm %s3434_s24, 1  ;;  %p3441_p6 = scmp.lt.s32.totalorder %s3434_s24, %s4399_s13 }
  0x8c   : > { %p3436_p1 = scmp.ne.s32.totalorder %s3434_s24, %s3435_s26  ;;  %p3442_p7 = scmp.lt.s32.totalorder %s3440_s0, %s3435_s26 }
  0x8e   : > { %p3438_p3 = pnand %p3436_p1, %p3861_p2  ;;  %p3443_p11 = por %p3442_p7, %p3441_p6 }
  0x90   : > { %p3439_p4 = pneg %p3438_p3 }
  0x92   : > { %p3444_p13 = pnand %p3443_p11, %p3439_p4 }
  0x94   : > { %3447 = shalt.err (!%p3444_p13)
}
  0x95   : > { %3111 = dma.hbm_to_vmem [thread:$0]  (!%p3842_p0), %s692_s1, 16, %s694_s27, %s3857_s28  }
  0x96   : > { %s4448_s3 = sld [smem:[#allocation33_spill]]  ;;  %s3668_s29 = smov [#allocation7]  }
  0x97   : > { %s534_s2 = sshll.u32 %s3668_s29, 4  ;;  %s706_s26 = scalar_lea.hbm %s4400_s14, %s3661_s30  ;;  %s535_s2 = int_to_ptr.vmem [resolvable:$true] %s534_s2 }
  0x98   : > { %s703_s4 = scalar_lea.vmem [#allocation15], %s3837_s19  ;;  %s708_s0 = sshll.u32 %s706_s26, 4  ;;  %s709_s0 = int_to_ptr.hbm [resolvable:$true] %s708_s0 }
  0x99   : > { %s710_s5 = sshll.u32 %s703_s4, 4  ;;  %s544_s10 = sshll.u32 %s4403_s17, 4  ;;  %s711_s5 = int_to_ptr.vmem [resolvable:$true] %s710_s5  ;;  %s545_s10 = int_to_ptr.hbm [resolvable:$true] %s544_s10 }
  0x9a   : > { %s3493_s6 = sshra.s32 %s709_s0, 4  ;;  %s3500_s29 = scalar_lea.hbm %s4400_s14, 4  ;;  %s3494_s6 = int_to_ptr.hbm [resolvable:$true] %s3493_s6 }
  0x9b   : > { %s3495_s16 = scalar_lea.hbm %s3494_s6, 1  ;;  %p3501_p6 = scmp.lt.s32.totalorder %s3494_s6, %s4400_s14 }
  0x9c   : > { %s532_s8 = sshll.u32 %s4448_s3, 4  ;;  %p3496_p1 = scmp.ne.s32.totalorder %s3494_s6, %s3495_s16  ;;  %s533_s8 = int_to_ptr.hbm [resolvable:$true] %s532_s8 }
  0x9d   : > { %3089 = dma.hbm_to_vmem [thread:$0]  (!%p3831_p12), %s533_s8, 16, %s535_s2, [#allocation8]  }
  0x9e   : > { %p3498_p3 = pnand %p3496_p1, %p3861_p2  ;;  %p3502_p7 = scmp.lt.s32.totalorder %s3500_s29, %s3495_s16 }
  0xa0   : > { %p3499_p4 = pneg %p3498_p3  ;;  %p3503_p11 = por %p3502_p7, %p3501_p6 }
  0xa2   : > { %p3504_p13 = pnand %p3503_p11, %p3499_p4 }
  0xa4   : > { %3507 = shalt.err (!%p3504_p13)
}
  0xa5   : > { %3114 = dma.hbm_to_vmem [thread:$0]  (!%p3842_p0), %s709_s0, 16, %s711_s5, %s3857_s28  }
  0xa6   : > { %s3669_s24 = smov [#allocation17]   ;;  %s723_s27 = scalar_lea.hbm %s4401_s15, %s3661_s30 }
  0xa7   : > { %s546_s26 = sshll.u32 %s3669_s24, 4  ;;  %s725_s6 = sshll.u32 %s723_s27, 4  ;;  %s547_s26 = int_to_ptr.vmem [resolvable:$true] %s546_s26  ;;  %s726_s6 = int_to_ptr.hbm [resolvable:$true] %s725_s6 }
  0xa8   : > { %3092 = dma.hbm_to_vmem [thread:$0]  (!%p3831_p12), %s545_s10, 16, %s547_s26, [#allocation8]  }
  0xa9   : > { %s720_s16 = scalar_lea.vmem [#allocation16], %s3837_s19  ;;  %s3553_s8 = sshra.s32 %s726_s6, 4  ;;  %s3554_s8 = int_to_ptr.hbm [resolvable:$true] %s3553_s8 }
  0xaa   : > { %s727_s18 = sshll.u32 %s720_s16, 4  ;;  %s3555_s29 = scalar_lea.hbm %s3554_s8, 1  ;;  %s728_s18 = int_to_ptr.vmem [resolvable:$true] %s727_s18 }
  0xab   : > { %p3556_p1 = scmp.ne.s32.totalorder %s3554_s8, %s3555_s29  ;;  %s3560_s2 = scalar_lea.hbm %s4401_s15, 4 }
  0xac   : > { %p3561_p12 = scmp.lt.s32.totalorder %s3554_s8, %s4401_s15  ;;  %p3562_p6 = scmp.lt.s32.totalorder %s3560_s2, %s3555_s29 }
  0xad   : > { %p3558_p3 = pnand %p3556_p1, %p3861_p2 }
  0xae   : > { %p3563_p7 = por %p3562_p6, %p3561_p12 }
  0xaf   : > { %p3559_p4 = pneg %p3558_p3 }
  0xb1   : > { %p3564_p11 = pnand %p3563_p7, %p3559_p4 }
  0xb3   : > { %3567 = shalt.err (!%p3564_p11)
}
  0xb4   : > { %3117 = dma.hbm_to_vmem [thread:$0]  (!%p3842_p0), %s726_s6, 16, %s728_s18, %s3857_s28  }
  0xb5   : > { %747 = sbr.rel (%p3820_p10) target bundleno = 2901 (0xb55), region = 92  ;;  %s4449_s19 = sld [smem:[#allocation26_spill]] (!%p3820_p10) }
  0xba   : > { %3628 = dma.done.wait (%p136_p5), [#allocation5], 16  }
  0xbb   : > { %3630 = vsyncadd (%p136_p5), [#allocation5], 4294967280 }
  0xbc   : > { %3632 = dma.done.wait (%p136_p5), [#allocation8], 16  }
  0xbd   : > { %3634 = vsyncadd (%p136_p5), [#allocation8], 4294967280  ;;  %s4450_s21 = sld [smem:[#allocation24_spill]]  ;;  %s759_s20 = sand.u32 1, %s4449_s19  }
  0xbe   : > { %s760_s10 = scalar_lea.sflag [#allocation5], %s759_s20 }
  0xc3   : > { %s4006_s28 = sand.u32 1, %s4450_s21  }
  0xc4   : > { %s3049_s23 = smul.u32 192, %s4006_s28 }
  0xc6   : > { %s4009_s24 = scalar_lea.vmem [#allocation9], %s3049_s23 }
  0xc7   : > { %3636 = dma.done.wait (%p3815_p8), %s760_s10, 5232  }
  0xc8   : > { %3638 = vsyncadd (%p3815_p8), %s760_s10, 4294962064  ;;  %s2653_s26 = sshll.u32 %s4006_s28, 1  ;;  %s2654_s4 = sshll.u32 %s4006_s28, 7 }
  0xc9   : > { %s4019_s6 = scalar_lea.vmem [#allocation12], %s2653_s26  ;;  %s4021_s16 = scalar_lea.vmem [#allocation13], %s2654_s4 }
  0xca   : > { %3640 = dma.done.wait (%p136_p5), [#allocation8], 16  }
  0xcb   : > { %3642 = vsyncadd (%p136_p5), [#allocation8], 4294967280  ;;  %p935_p8 = scmp.lt.s32.totalorder %s4449_s19, 3  ;;  %s952_s5 = ssub.s32 3, %s4449_s19 }
  0xcc   : > { %s2660_s0 = sshll.u32 %s952_s5, 4  ;;  %s4452_s20 = sld [smem:[#allocation36_spill]] }
  0xcd   : > { %s4033_s2 = scalar_select %p935_p8, %s4449_s19, 3 }
  0xce   : > { %p954_p10 = scmp.lt.s32.totalorder %s2660_s0, 63  ;;  %s4453_s4 = sld [smem:[#allocation38_spill]] }
  0xcf   : > { %s3050_s22 = smul.u32 3, %s4033_s2  ;;  %s2973_s30 = sshll.u32 %s4033_s2, 6 }
  0xd0   : > { %s4454_s18 = sld [smem:[#allocation35_spill]]  ;;  %s2974_s1 = sshll.u32 %s4033_s2, 7 }
  0xd1   : > { %s4455_s9 = sld [smem:[#allocation40_spill]]  ;;  %s4473_s0 = smov (!%p954_p10, %s2660_s0), 63 }
  0xd2   : > { %s4040_s23 = scalar_lea.vmem %s4452_s20, %s2973_s30  ;;  %s2661_s12 = sshll.u32 %s4473_s0, 2 }
  0xd3   : > { %s4456_s25 = sld [smem:[#allocation43_spill]] }
  0xd4   : > { %s946_s29 = scalar_lea.vmem %s4453_s4, %s4033_s2 }
  0xd5   : > { %964 = sbr.rel (%p2640_p9) target bundleno = 496 (0x1f0), region = 140 }
  0xd6   : > { %s4049_s27 = scalar_lea.vmem %s4454_s18, %s3050_s22  ;;  %s4457_s18 = sld [smem:[#allocation30_spill]] (!%p2640_p9) }
  0xd7   : > { %s4055_s11 = scalar_lea.vmem %s4455_s9, %s2974_s1 }
  0xd9   : > { %s4060_s20 = scalar_lea.vmem %s4456_s25, %s2661_s12 }
  0xda   : > { %v3670_v2 = vmov 128.0   ;;  %vm1028_vm1 = vcmask 58368   ;;  %v3671_v20 = vmov 0.0   ;;  %v3173_v32 = vld [vmem:[#allocation4] ss:$0 sm:$0xff] }
  0xdb   : > { %3175 = vrcp.f32 %v3670_v2  ;;  %1029 = vst.msk [vmem:[#allocation3] sm:$0x3] %vm1028_vm1, %v3671_v20  ;;  %v3174_v35 = vld [vmem:[#allocation7] ss:$0 sm:$0xff] }
  0xdc   : > { %v965_v0 = vld [vmem:[%s4457_s18] sm:$0xff]  ;;  %v966_v1 = vld [vmem:[%s4457_s18 + $0x8] sm:$0xff] }
  0xdd   : > { %969 = vadd.xlane.f32.xlu0 %v965_v0 }
  0xe1   : > { %v3176_v3 = vpop.eup %3175 }
  0xe2   : > { %v974_v4 = vmul.f32 128.0, %v3176_v3  ;;  %vm978_vm0 = vweird.f32 %v3176_v3 }
  0xe4   : > { %v975_v5 = vsub.f32 1.0, %v974_v4 }
  0xe5   : > { %971 = vadd.xlane.f32.xlu0 %v966_v1 }
  0xe6   : > { %v976_v6 = vmul.f32 %v3176_v3, %v975_v5 }
  0xe8   : > { %v977_v7 = vadd.f32 %v3176_v3, %v976_v6 }
  0xea   : > { %v979_v8 = vsel %vm978_vm0, %v3176_v3, %v977_v7 }
 0x150   : > { %v970_v9 = vpop.xlane.xlu0 %969 }
 0x151   : > { %v980_v10 = vmul.f32 %v979_v8, %v970_v9 }
 0x153   : > { %v982_v11 = vsub.f32 %v965_v0, %v980_v10 }
 0x155   : > { %v984_v12 = vmul.f32 %v982_v11, %v982_v11 }
 0x157   : > { %986 = vadd.xlane.f32.xlu1 %v984_v12 }
 0x158   : > { %v972_v13 = vpop.xlane.xlu0 %971 }
 0x159   : > { %v981_v14 = vmul.f32 %v979_v8, %v972_v13 }
 0x15b   : > { %v983_v15 = vsub.f32 %v966_v1, %v981_v14 }
 0x15d   : > { %v985_v16 = vmul.f32 %v983_v15, %v983_v15 }
 0x15f   : > { %988 = vadd.xlane.f32.xlu1 %v985_v16 }
 0x1ca   : > { %v987_v17 = vpop.xlane.xlu1 %986 }
 0x1cb   : > { %v990_v18 = vmul.f32 %v987_v17, %v979_v8 }
 0x1cd   : > { %v992_v19 = vadd.f32 1e-12, %v990_v18 }
 0x1cf   : > { %3177 = vrsqrt.f32 %v992_v19  ;;  %vm1000_vm3 = vweird.f32 %v992_v19 }
 0x1d2   : > { %v989_v21 = vpop.xlane.xlu1 %988 }
 0x1d3   : > { %v991_v22 = vmul.f32 %v989_v21, %v979_v8 }
 0x1d5   : > { %v3178_v23 = vpop.eup %3177  ;;  %v993_v24 = vadd.f32 1e-12, %v991_v22 }
 0x1d6   : > { %v995_v25 = vmul.f32 %v3178_v23, %v992_v19  ;;  %vm1001_vm2 = vweird.f32 %v3178_v23 }
 0x1d7   : > { %3179 = vrsqrt.f32 %v993_v24  ;;  %vm1002_vm4 = vmor %vm1000_vm3, %vm1001_vm2  ;;  %vm1010_vm6 = vweird.f32 %v993_v24 }
 0x1d8   : > { %v996_v26 = vmul.f32 %v3178_v23, %v995_v25 }
 0x1da   : > { %v997_v27 = vmul.f32 0.5, %v996_v26 }
 0x1dc   : > { %v998_v28 = vsub.f32 1.5, %v997_v27 }
 0x1dd   : > { %v3180_v29 = vpop.eup %3179 }
 0x1de   : > { %v999_v30 = vmul.f32 %v3178_v23, %v998_v28  ;;  %v1005_v31 = vmul.f32 %v3180_v29, %v993_v24  ;;  %vm1011_vm5 = vweird.f32 %v3180_v29 }
 0x1df   : > { %vm1012_vm7 = vmor %vm1010_vm6, %vm1011_vm5 }
 0x1e0   : > { %v1003_v33 = vsel %vm1002_vm4, %v3178_v23, %v999_v30  ;;  %v1006_v34 = vmul.f32 %v3180_v29, %v1005_v31 }
 0x1e1   : > { %v1014_v36 = vmul.f32 %v1003_v33, %v982_v11 }
 0x1e2   : > { %v1007_v37 = vmul.f32 0.5, %v1006_v34 }
 0x1e3   : > { %v1019_v38 = vmul.f32 %v3173_v32, %v1014_v36 }
 0x1e4   : > { %v1008_v39 = vsub.f32 1.5, %v1007_v37 }
 0x1e5   : > { %v1024_v40 = vadd.f32 %v3174_v35, %v1019_v38 }
 0x1e6   : > { %v1009_v41 = vmul.f32 %v3180_v29, %v1008_v39 }
 0x1e7   : > { %1026 = vst [vmem:[#allocation2] sm:$0xff] %v1024_v40 }
 0x1e8   : > { %v1013_v42 = vsel %vm1012_vm7, %v3180_v29, %v1009_v41 }
 0x1e9   : > { %v1015_v43 = vmul.f32 %v1013_v42, %v983_v15 }
 0x1eb   : > { %v1020_v44 = vmul.f32 %v3173_v32, %v1015_v43 }
 0x1ed   : > { %v1025_v45 = vadd.f32 %v3174_v35, %v1020_v44 }
 0x1ef   : > { %1027 = vst [vmem:[#allocation2 + $0x8] sm:$0xff] %v1025_v45 }
 0x1f0 PF: > { %v2749_v46 = vld [vmem:[%s4009_s24 + $0xa8] sm:$0xf]  ;;  %v2997_v47 = vld [vmem:[%s4009_s24 + $0xb0] sm:$0xf0]  ;;  %v2996_v48 = vld [vmem:[%s4009_s24 + $0xac] sm:$0xf] }
 0x1f1   : > { %v2750_v49 = vor.u32 %v2997_v47, %v2749_v46  ;;  %v2751_v50 = vld [vmem:[%s4009_s24 + $0xb4] sm:$0xf0]  ;;  %v2737_v51 = vld [vmem:[%s4009_s24 + $0x90] sm:$0xf]  ;;  %v2994_v52 = vld [vmem:[%s4009_s24 + $0x98] sm:$0xf0] }
 0x1f2   : > { %v2754_v53 = vor.u32 %v2996_v48, %v2751_v50  ;;  %v2993_v54 = vld [vmem:[%s4009_s24 + $0x94] sm:$0xf]  ;;  %v2739_v55 = vld [vmem:[%s4009_s24 + $0x9c] sm:$0xf0]  ;;  %v2738_v56 = vor.u32 %v2994_v52, %v2737_v51  ;;  %v2725_v58 = vld [vmem:[%s4009_s24 + $0x78] sm:$0xf] }
 0x1f3   : > { %1201 = vmatpush.bf16.msra.mxu0 %v2750_v49  ;;  %v2742_v57 = vor.u32 %v2993_v54, %v2739_v55  ;;  %v2991_v59 = vld [vmem:[%s4009_s24 + $0x80] sm:$0xf0]  ;;  %v2990_v60 = vld [vmem:[%s4009_s24 + $0x7c] sm:$0xf]  ;;  %v2727_v61 = vld [vmem:[%s4009_s24 + $0x84] sm:$0xf0] }
 0x1f4   : > { %1215 = vmatpush.bf16.msra.mxu1 %v2754_v53  ;;  %v2726_v62 = vor.u32 %v2991_v59, %v2725_v58  ;;  %v2730_v63 = vor.u32 %v2990_v60, %v2727_v61  ;;  %v2713_v0 = vld [vmem:[%s4009_s24 + $0x60] sm:$0xf]  ;;  %v2988_v1 = vld [vmem:[%s4009_s24 + $0x68] sm:$0xf0]  ;;  %v2987_v2 = vld [vmem:[%s4009_s24 + $0x64] sm:$0xf] }
 0x1f5   : > { %v2715_v3 = vld [vmem:[%s4009_s24 + $0x6c] sm:$0xf0]  ;;  %v2714_v4 = vor.u32 %v2988_v1, %v2713_v0  ;;  %v2701_v5 = vld [vmem:[%s4009_s24 + $0x48] sm:$0xf]  ;;  %v2998_v7 = vld [vmem:[%s4009_s24 + $0xb8] sm:$0xf0] }
 0x1f6   : > { %v2757_v6 = vld [vmem:[%s4009_s24 + $0xb0] sm:$0xf]  ;;  %v2718_v8 = vor.u32 %v2987_v2, %v2715_v3  ;;  %v2985_v9 = vld [vmem:[%s4009_s24 + $0x50] sm:$0xf0]  ;;  %v2745_v11 = vld [vmem:[%s4009_s24 + $0x98] sm:$0xf] }
 0x1f7   : > { %1202 = vmatpush.bf16.msra.mxu0 %v2738_v56  ;;  %v2758_v10 = vor.u32 %v2998_v7, %v2757_v6  ;;  %v2995_v12 = vld [vmem:[%s4009_s24 + $0xa0] sm:$0xf0]  ;;  %v2984_v13 = vld [vmem:[%s4009_s24 + $0x4c] sm:$0xf]  ;;  %v2703_v14 = vld [vmem:[%s4009_s24 + $0x54] sm:$0xf0]  ;;  %v2702_v16 = vor.u32 %v2985_v9, %v2701_v5 }
 0x1f8   : > { %1216 = vmatpush.bf16.msra.mxu1 %v2742_v57  ;;  %v2746_v15 = vor.u32 %v2995_v12, %v2745_v11  ;;  %v2733_v17 = vld [vmem:[%s4009_s24 + $0x80] sm:$0xf]  ;;  %v2992_v18 = vld [vmem:[%s4009_s24 + $0x88] sm:$0xf0]  ;;  %v2706_v19 = vor.u32 %v2984_v13, %v2703_v14  ;;  %v2689_v20 = vld [vmem:[%s4009_s24 + $0x30] sm:$0xf] }
 0x1f9   : > { %1229 = vmatpush.bf16.msra.mxu2 %v2758_v10  ;;  %v2982_v21 = vld [vmem:[%s4009_s24 + $0x38] sm:$0xf0]  ;;  %v2981_v22 = vld [vmem:[%s4009_s24 + $0x34] sm:$0xf]  ;;  %v2691_v23 = vld [vmem:[%s4009_s24 + $0x3c] sm:$0xf0]  ;;  %v2734_v24 = vor.u32 %v2992_v18, %v2733_v17 }
 0x1fa   : > { %v2690_v25 = vor.u32 %v2982_v21, %v2689_v20  ;;  %v2721_v26 = vld [vmem:[%s4009_s24 + $0x68] sm:$0xf]  ;;  %v2989_v27 = vld [vmem:[%s4009_s24 + $0x70] sm:$0xf0]  ;;  %v2694_v28 = vor.u32 %v2981_v22, %v2691_v23  ;;  %v2677_v29 = vld [vmem:[%s4009_s24 + $0x18] sm:$0xf] }
 0x1fb   : > { %1203 = vmatpush.bf16.msra.mxu0 %v2726_v62  ;;  %v2979_v30 = vld [vmem:[%s4009_s24 + $0x20] sm:$0xf0]  ;;  %v2978_v31 = vld [vmem:[%s4009_s24 + $0x1c] sm:$0xf]  ;;  %v2679_v32 = vld [vmem:[%s4009_s24 + $0x24] sm:$0xf0]  ;;  %v2722_v33 = vor.u32 %v2989_v27, %v2721_v26 }
 0x1fc   : > { %1217 = vmatpush.bf16.msra.mxu1 %v2730_v63  ;;  %v2678_v34 = vor.u32 %v2979_v30, %v2677_v29  ;;  %v2709_v35 = vld [vmem:[%s4009_s24 + $0x50] sm:$0xf]  ;;  %v2986_v36 = vld [vmem:[%s4009_s24 + $0x58] sm:$0xf0]  ;;  %v2682_v37 = vor.u32 %v2978_v31, %v2679_v32  ;;  %v2665_v38 = vld [vmem:[%s4009_s24] sm:$0xf] }
 0x1fd   : > { %1230 = vmatpush.bf16.msra.mxu2 %v2746_v15  ;;  %v2976_v39 = vld [vmem:[%s4009_s24 + $0x8] sm:$0xf0]  ;;  %v2975_v40 = vld [vmem:[%s4009_s24 + $0x4] sm:$0xf]  ;;  %v2667_v41 = vld [vmem:[%s4009_s24 + $0xc] sm:$0xf0]  ;;  %v2710_v43 = vor.u32 %v2986_v36, %v2709_v35 }
 0x1fe   : > { %v4112_v42 = vld [vmem:[#allocation2] sm:$0xff]  ;;  %v2666_v44 = vor.u32 %v2976_v39, %v2665_v38  ;;  %v4114_v45 = vld [vmem:[#allocation2 + $0x8] sm:$0xff]  ;;  %v2983_v47 = vld [vmem:[%s4009_s24 + $0x40] sm:$0xf0]  ;;  %v2670_v48 = vor.u32 %v2975_v40, %v2667_v41  ;;  %vm1253_vm8 = vcmask 261120   ;;  %s3672_s3 = smov 96  }
 0x1ff   : > { %1204 = vmatpush.bf16.msra.mxu0 %v2714_v4  ;;  %v2697_v46 = vld [vmem:[%s4009_s24 + $0x38] sm:$0xf]  ;;  %v1065_v49 = vpack.c.bf16 %v4114_v45, %v4112_v42  ;;  %v2685_v51 = vld [vmem:[%s4009_s24 + $0x20] sm:$0xf]  ;;  %v2980_v52 = vld [vmem:[%s4009_s24 + $0x28] sm:$0xf0] }
 0x200   : > { %1218 = vmatpush.bf16.msra.mxu1 %v2718_v8  ;;  %v2698_v50 = vor.u32 %v2983_v47, %v2697_v46  ;;  %v2686_v53 = vor.u32 %v2980_v52, %v2685_v51  ;;  %v2673_v54 = vld [vmem:[%s4009_s24 + $0x8] sm:$0xf]  ;;  %v2977_v55 = vld [vmem:[%s4009_s24 + $0x10] sm:$0xf0]  ;;  %s3673_s7 = smov 64   ;;  %s3674_s9 = smov 32  }
 0x201   : > { %1231 = vmatpush.bf16.msra.mxu2 %v2734_v24  ;;  %v2674_v56 = vor.u32 %v2977_v55, %v2673_v54  ;;  %v4125_v57 = vld [vmem:[%s4049_s27] sm:$0x7]  ;;  %vm1320_vm9 = vcmask 1043456   ;;  %s4458_s24 = sld [smem:[#allocation31_spill]]  ;;  %vm1292_vm10 = vcmask 64512   ;;  %vm1736_vm11 = vcmask 523264  }
 0x202   : > { %v1067_v58 = vperm.slane %v4125_v57, 0  ;;  %v1068_v59 = vperm.slane %v4125_v57, 1  ;;  %v1069_v20 = vperm.slane %v4125_v57, 2  ;;  %vm1739_vm12 = vcmask 785408   ;;  %s4459_s0 = scalar_lea.vmem [#allocation10], %s4006_s28  ;;  %s4461_s5 = scalar_lea.vmem [#allocation11], %s4006_s28 }
 0x203   : > { %1205 = vmatpush.bf16.msra.mxu0 %v2702_v16 }
 0x204   : > { %1219 = vmatpush.bf16.msra.mxu1 %v2706_v19 }
 0x205   : > { %1232 = vmatpush.bf16.msra.mxu2 %v2722_v33 }
 0x207   : > { %1206 = vmatpush.bf16.msra.mxu0 %v2690_v25  ;;  %v4165_v33 = vld [vmem:[%s4458_s24] sm:$0xff]  ;;  %v4174_v41 = vld [vmem:[%s4458_s24 + $0x8] sm:$0xff] }
 0x208   : > { %1220 = vmatpush.bf16.msra.mxu1 %v2694_v28 }
 0x209   : > { %1233 = vmatpush.bf16.msra.mxu2 %v2710_v43 }
 0x20b   : > { %1207 = vmatpush.bf16.msra.mxu0 %v2678_v34 }
 0x20c   : > { %1221 = vmatpush.bf16.msra.mxu1 %v2682_v37 }
 0x20d   : > { %1234 = vmatpush.bf16.msra.mxu2 %v2698_v50 }
 0x20f   : > { %1208 = vmatpush.bf16.msra.mxu0 %v2666_v44 }
 0x210   : > { %1222 = vmatpush.bf16.msra.mxu1 %v2670_v48 }
 0x211   : > { %1235 = vmatpush.bf16.msra.mxu2 %v2686_v53 }
 0x212   : > { %1209 = vmatmul.bf16.vlgmr.msra.gmra.mxu0 %v1065_v49 }
 0x213   : > { %1223 = vmatmul.bf16.vlgmr.msra.gmra.mxu1 %v1065_v49 }
 0x215   : > { %1236 = vmatpush.bf16.msra.mxu2 %v2674_v56 }
 0x218   : > { %1237 = vmatmul.bf16.vlgmr.msra.gmra.mxu2 %v1065_v49 }
 0x28f   : > { %v1210_v60 = vpop.f32.mrf.mxu0 }
 0x290   : > { %v1211_v61 = vadd.f32 %v1210_v60, %v1067_v58  ;;  %v1224_v62 = vpop.f32.mrf.mxu1 }
 0x291   : > { %v1225_v63 = vadd.f32 %v1224_v62, %v1068_v59 }
 0x292   : > { %v1243_v0 = vmul.f32 0.17677669, %v1211_v61 }
 0x293   : > { %v1247_v1 = vpack.c.bf16 %v1225_v63, %v1225_v63 }
 0x294   : > { %v1245_v2 = vpack.c.bf16 %v1243_v0, %v1243_v0 }
 0x295   : > { %v1362_v3 = vunpack.c.l.b16 %v1247_v1  ;;  %v1258_v4 = vsel %vm1253_vm8, %v1247_v1, 0 }
 0x296   : > { %v1357_v5 = vunpack.c.l.b16 %v1245_v2  ;;  %1267 = vmatpush.bf16.xpose.msra.mxu3 %v1258_v4 }
 0x297   : > { %v4130_v6 = vpack.c.b16 %v1362_v3, %v1362_v3  ;;  %v1212_v7 = vpop.f32.mrf.mxu0 }
 0x298   : > { %v1213_v8 = vadd.f32 %v1212_v7, %v1067_v58  ;;  %v1226_v9 = vpop.f32.mrf.mxu1  ;;  %v1358_v10 = vpack.c.b16 %v1357_v5, %v1357_v5 }
 0x299   : > { %v1227_v11 = vadd.f32 %v1226_v9, %v1068_v59  ;;  %1364 = vrot.lane.b32.xlu1 %v4130_v6, %s3672_s3 }
 0x29a   : > { %v1244_v12 = vmul.f32 0.17677669, %v1213_v8  ;;  %1359 = vrot.lane.b32.xlu2 %v1358_v10, %s3672_s3 }
 0x29b   : > { %v1248_v13 = vpack.c.bf16 %v1227_v11, %v1227_v11  ;;  %v1238_v21 = vpop.f32.mrf.mxu2 }
 0x29c   : > { %v1246_v14 = vpack.c.bf16 %v1244_v12, %v1244_v12  ;;  %v1239_v22 = vadd.f32 %v1238_v21, %v1069_v20 }
 0x29d   : > { %v1391_v15 = vunpack.c.l.b16 %v1248_v13  ;;  %2759 = vmatmul.msk.bf16.vlgmr.msra.gmra.mxu3 %vm1253_vm8, %v1245_v2  ;;  %v1277_v16 = vsel %vm1253_vm8, %v1248_v13, 0 }
 0x29e   : > { %v1386_v17 = vunpack.c.l.b16 %v1246_v14  ;;  %1286 = vmatpush.bf16.xpose.msrb.mxu3 %v1277_v16  ;;  %v4152_v23 = vpack.c.bf16 %v1239_v22, %v1239_v22 }
 0x29f   : > { %v1392_v18 = vpack.c.b16 %v1391_v15, %v1391_v15 }
 0x2a0   : > { %v4137_v19 = vpack.c.b16 %v1386_v17, %v1386_v17  ;;  %v1322_v24 = vsel %vm1320_vm9, %v4152_v23, 0  ;;  %v1439_v4 = vunpack.c.l.b16 %v4152_v23 }
 0x2a1   : > { %1393 = vrot.lane.b32.xlu1 %v1392_v18, %s3672_s3 }
 0x2a2   : > { %1388 = vrot.lane.b32.xlu2 %v4137_v19, %s3672_s3  ;;  %v4194_v5 = vpack.c.b16 %v1439_v4, %v1439_v4 }
 0x2a3   : > { %v1240_v48 = vpop.f32.mrf.mxu2 }
 0x2a4   : > { %v1241_v1 = vadd.f32 %v1240_v48, %v1069_v20 }
 0x2a6   : > { %1331 = vmatpush.bf16.msra.mxu3 %v1322_v24  ;;  %v4189_v2 = vpack.c.bf16 %v1241_v1, %v1241_v1 }
 0x2a8   : > { %v1341_v3 = vsel %vm1320_vm9, %v4189_v2, 0 }
 0x2a9   : > { %1511 = vrot.lane.b32.xlu1 %v1392_v18, %s3673_s7  ;;  %1350 = vmatpush.bf16.msrb.mxu0 %v1341_v3 }
 0x2aa   : > { %1486 = vrot.lane.b32.xlu2 %v1358_v10, %s3673_s7 }
 0x2ad   : > { %2760 = vmatmul.msk.bf16.vlgmr.msrb.gmra.mxu3 %vm1253_vm8, %v1246_v14 }
 0x2b1   : > { %1509 = vrot.lane.b32.xlu1 %v4137_v19, %s3673_s7 }
 0x2b2   : > { %1600 = vrot.lane.b32.xlu2 %v4130_v6, %s3674_s9 }
 0x2b9   : > { %1623 = vrot.lane.b32.xlu1 %v1392_v18, %s3674_s9 }
 0x2ba   : > { %1598 = vrot.lane.b32.xlu2 %v1358_v10, %s3674_s9 }
 0x2f4   : > { %v4157_v27 = vpop.permute.xlu2 %1359 }
 0x2fc   : > { %v1389_v30 = vpop.permute.xlu2 %1388 }
 0x304   : > { %v1487_v10 = vpop.permute.xlu2 %1486 }
 0x30b   : > { %v1365_v25 = vpop.permute.xlu1 %1364 }
 0x30c   : > { %v1370_v26 = vsel %vm1253_vm8, %v1365_v25, 0  ;;  %v1601_v14 = vpop.permute.xlu2 %1600 }
 0x30d   : > { %1379 = vmatpush.bf16.xpose.msrb.mxu3 %v1370_v26  ;;  %v1606_v17 = vsel %vm1253_vm8, %v1601_v14, 0 }
 0x313   : > { %v1394_v28 = vpop.permute.xlu1 %1393 }
 0x314   : > { %v1399_v29 = vsel %vm1253_vm8, %v1394_v28, 0  ;;  %v1599_v23 = vpop.permute.xlu2 %1598 }
 0x315   : > { %1408 = vmatpush.bf16.xpose.msrb.mxu2 %v1399_v29 }
 0x31b   : > { %v1512_v31 = vpop.permute.xlu1 %1511 }
 0x31c   : > { %v1517_v32 = vsel %vm1253_vm8, %v1512_v31, 0  ;;  %2764 = vmatmul.msk.bf16.vlgmr.msrb.gmra.mxu2 %vm1253_vm8, %v1389_v30 }
 0x31d   : > { %1526 = vmatpush.bf16.xpose.msra.mxu2 %v1517_v32 }
 0x320   : > { %v1269_v34 = vpop.f32.mrf.mxu3 }
 0x321   : > { %v1270_v35 = vadd.f32 %v1269_v34, %v4165_v33 }
 0x323   : > { %v1510_v36 = vpop.permute.xlu1 %1509  ;;  %v1293_v37 = vsel %vm1292_vm10, %v1270_v35, -inf }
 0x324   : > { %1294 = vmax.xlane.f32.xlu0 %v1293_v37 }
 0x328   : > { %v1271_v38 = vpop.f32.mrf.mxu3 }
 0x32b   : > { %v1624_v39 = vpop.permute.xlu1 %1623 }
 0x32c   : > { %v1629_v40 = vsel %vm1253_vm8, %v1624_v39, 0  ;;  %2768 = vmatmul.msk.bf16.vlgmr.msra.gmra.mxu2 %vm1253_vm8, %v1510_v36 }
 0x32d   : > { %1638 = vmatpush.bf16.xpose.msrb.mxu2 %v1629_v40 }
 0x330   : > { %v1288_v43 = vpop.f32.mrf.mxu3 }
 0x331   : > { %v1289_v44 = vadd.f32 %v1288_v43, %v4174_v41 }
 0x333   : > { %v1296_v46 = vsel %vm1292_vm10, %v1289_v44, -inf }
 0x334   : > { %1297 = vmax.xlane.f32.xlu1 %v1296_v46 }
 0x338   : > { %v1290_v47 = vpop.f32.mrf.mxu3 }
 0x397   : > { %v1295_v49 = vpop.xlane.xlu0 %1294 }
 0x398   : > { %v1299_v50 = vsub.f32 %v1270_v35, %v1295_v49 }
 0x39a   : > { %v1301_v51 = vmul.f32 1.442695, %v1299_v50 }
 0x39c   : > { %3202 = vpow2.f32 %v1301_v51 }
 0x39f   : > { %v1410_v52 = vpop.f32.mrf.mxu2 }
 0x3a2   : > { %v3203_v53 = vpop.eup %3202 }
 0x3a3   : > { %v1305_v54 = vsel %vm1292_vm10, %v3203_v53, 0.0 }
 0x3a4   : > { %1306 = vadd.xlane.f32.xlu0 %v1305_v54 }
 0x3a7   : > { %v1412_v55 = vpop.f32.mrf.mxu2  ;;  %v1298_v56 = vpop.xlane.xlu1 %1297 }
 0x3a8   : > { %v1300_v57 = vsub.f32 %v1289_v44, %v1298_v56  ;;  %v1463_v55 = vunpack.c.l.b16 %v4189_v2 }
 0x3aa   : > { %v1303_v58 = vmul.f32 1.442695, %v1300_v57 }
 0x3ac   : > { %3204 = vpow2.f32 %v1303_v58 }
 0x3af   : > { %v1528_v59 = vpop.f32.mrf.mxu2 }
 0x3b0   : > { %v4180_v60 = vadd.f32 %v1528_v59, %v4174_v41 }
 0x3b2   : > { %v1535_v61 = vsel %vm1292_vm10, %v4180_v60, -inf  ;;  %v3205_v62 = vpop.eup %3204 }
 0x3b3   : > { %1536 = vmax.xlane.f32.xlu1 %v1535_v61  ;;  %v1308_v0 = vsel %vm1292_vm10, %v3205_v62, 0.0 }
 0x3b7   : > { %v1530_v63 = vpop.f32.mrf.mxu2 }
 0x3b8   : > { %1488 = vrot.lane.b32.xlu0 %v4130_v6, %s3673_s7  ;;  %v1411_v6 = vadd.f32 %v1410_v52, %v4174_v41 }
 0x3ba   : > { %v1417_v7 = vsel %vm1292_vm10, %v1411_v6, -inf }
 0x3bb   : > { %1309 = vadd.xlane.f32.xlu1 %v1308_v0 }
 0x3c0   : > { %1621 = vrot.lane.b32.xlu0 %v4137_v19, %s3674_s9 }
 0x3d4   : > { %1441 = vrot.lane.b32.xlu1 %v4194_v5, %s3672_s3 }
 0x3ea   : > { %1418 = vmax.xlane.f32.xlu0 %v1417_v7 }
 0x417   : > { %v1307_v8 = vpop.xlane.xlu0 %1306 }
 0x418   : > { %3206 = vrcp.f32 %v1307_v8 }
 0x41e   : > { %v3207_v9 = vpop.eup %3206 }
 0x41f   : > { %v1313_v11 = vmul.f32 %v3207_v9, %v3203_v53 }
 0x421   : > { %v1315_v12 = vpack.c.bf16 %v1313_v11, %v1313_v11 }
 0x423   : > { %2761 = vmatmul.msk.bf16.vlgmr.msra.gmra.mxu3 %vm1292_vm10, %v1315_v12 }
 0x426   : > { %v4201_v13 = vpop.xlane.xlu1 %1536 }
 0x427   : > { %v1539_v63 = vsub.f32 %v4180_v60, %v4201_v13 }
 0x429   : > { %v1542_v4 = vmul.f32 1.442695, %v1539_v63 }
 0x42a   : > { %v1489_v15 = vpop.permute.xlu0 %1488 }
 0x42b   : > { %v1494_v16 = vsel %vm1253_vm8, %v1489_v15, 0 }
 0x42c   : > { %1503 = vmatpush.bf16.xpose.msrb.mxu1 %v1494_v16 }
 0x42e   : > { %v1310_v18 = vpop.xlane.xlu1 %1309 }
 0x42f   : > { %3208 = vrcp.f32 %v1310_v18 }
 0x432   : > { %v1622_v19 = vpop.permute.xlu0 %1621 }
 0x433   : > { %2763 = vmatmul.msk.bf16.vlgmr.msrb.gmra.mxu3 %vm1253_vm8, %v4157_v27  ;;  %2767 = vmatmul.msk.bf16.vlgmr.msrb.gmra.mxu1 %vm1253_vm8, %v1487_v10 }
 0x434   : > { %1615 = vmatpush.bf16.xpose.msra.mxu1 %v1606_v17  ;;  %2772 = vmatmul.msk.bf16.vlgmr.msrb.gmra.mxu2 %vm1253_vm8, %v1622_v19 }
 0x435   : > { %v3209_v20 = vpop.eup %3208 }
 0x436   : > { %v1314_v21 = vmul.f32 %v3209_v20, %v3205_v62 }
 0x438   : > { %v1316_v22 = vpack.c.bf16 %v1314_v21, %v1314_v21 }
 0x43a   : > { %2762 = vmatmul.msk.bf16.vlgmr.msrb.gmra.mxu0 %vm1292_vm10, %v1316_v22 }
 0x443   : > { %2771 = vmatmul.msk.bf16.vlgmr.msra.gmra.mxu1 %vm1253_vm8, %v1599_v23 }
 0x446   : > { %v1442_v24 = vpop.permute.xlu1 %1441 }
 0x447   : > { %v1447_v25 = vsel %vm1320_vm9, %v1442_v24, 0 }
 0x448   : > { %1456 = vmatpush.bf16.msra.mxu3 %v1447_v25 }
 0x45d   : > { %v1419_v36 = vpop.xlane.xlu0 %1418 }
 0x45e   : > { %v1421_v43 = vsub.f32 %v1411_v6, %v1419_v36 }
 0x460   : > { %v1424_v49 = vmul.f32 1.442695, %v1421_v43 }
 0x462   : > { %3210 = vpow2.f32 %v1424_v49 }
 0x468   : > { %v3211_v53 = vpop.eup %3210 }
 0x469   : > { %v1429_v54 = vsel %vm1292_vm10, %v3211_v53, 0.0 }
 0x4a6   : > { %v4212_v26 = vpop.f32.mrf.mxu3 }
 0x4ae   : > { %v1335_v28 = vpop.f32.mrf.mxu3 }
 0x4b0   : > { %v1505_v27 = vpop.f32.mrf.mxu1 }
 0x4b1   : > { %v1506_v37 = vadd.f32 %v1505_v27, %v4165_v33 }
 0x4b3   : > { %v1532_v47 = vsel %vm1292_vm10, %v1506_v37, -inf }
 0x4b6   : > { %v1381_v29 = vpop.f32.mrf.mxu3 }
 0x4b7   : > { %v1382_v30 = vadd.f32 %v1381_v29, %v4165_v33  ;;  %v1640_v31 = vpop.f32.mrf.mxu2  ;;  %v4215_v32 = vpop.f32.mrf.mxu0 }
 0x4b8   : > { %v1507_v34 = vpop.f32.mrf.mxu1  ;;  %v1641_v50 = vadd.f32 %v1640_v31, %v4174_v41 }
 0x4b9   : > { %v1414_v35 = vsel %vm1292_vm10, %v1382_v30, -inf }
 0x4ba   : > { %1415 = vmax.xlane.f32.xlu2 %v1414_v35  ;;  %v1647_v52 = vsel %vm1292_vm10, %v1641_v50, -inf }
 0x4be   : > { %v1383_v38 = vpop.f32.mrf.mxu3 }
 0x4bf   : > { %v1642_v39 = vpop.f32.mrf.mxu2  ;;  %v1354_v40 = vpop.f32.mrf.mxu0 }
 0x4c0   : > { %v1617_v44 = vpop.f32.mrf.mxu1 }
 0x4c1   : > { %v1618_v46 = vadd.f32 %v1617_v44, %v4165_v33  ;;  %v1464_v33 = vpack.c.b16 %v1463_v55, %v1463_v55 }
 0x4c2   : > { %1533 = vmax.xlane.f32.xlu2 %v1532_v47 }
 0x4c3   : > { %v1644_v48 = vsel %vm1292_vm10, %v1618_v46, -inf }
 0x4c4   : > { %1645 = vmax.xlane.f32.xlu0 %v1644_v48 }
 0x4c8   : > { %v1619_v51 = vpop.f32.mrf.mxu1 }
 0x4ca   : > { %1648 = vmax.xlane.f32.xlu2 %v1647_v52 }
 0x4d2   : > { %1430 = vadd.xlane.f32.xlu2 %v1429_v54 }
 0x4d8   : > { %1465 = vrot.lane.b32.xlu0 %v1464_v33, %s3672_s3 }
 0x52d   : > { %v1416_v56 = vpop.xlane.xlu2 %1415 }
 0x52e   : > { %v1420_v57 = vsub.f32 %v1382_v30, %v1416_v56 }
 0x530   : > { %v1422_v58 = vmul.f32 1.442695, %v1420_v57 }
 0x532   : > { %3212 = vpow2.f32 %v1422_v58 }
 0x535   : > { %v1534_v59 = vpop.xlane.xlu2 %1533 }
 0x536   : > { %v1538_v41 = vsub.f32 %v1506_v37, %v1534_v59 }
 0x537   : > { %v1646_v61 = vpop.xlane.xlu0 %1645 }
 0x538   : > { %v3213_v62 = vpop.eup %3212  ;;  %v1540_v0 = vmul.f32 1.442695, %v1538_v41  ;;  %v1650_v1 = vsub.f32 %v1618_v46, %v1646_v61 }
 0x539   : > { %v1426_v3 = vsel %vm1292_vm10, %v3213_v62, 0.0 }
 0x53a   : > { %3214 = vpow2.f32 %v1540_v0  ;;  %v1652_v2 = vmul.f32 1.442695, %v1650_v1  ;;  %1427 = vadd.xlane.f32.xlu0 %v1426_v3 }
 0x53c   : > { %3216 = vpow2.f32 %v1652_v2 }
 0x53d   : > { %v1649_v6 = vpop.xlane.xlu2 %1648  ;;  %3218 = vpow2.f32 %v1542_v4 }
 0x53e   : > { %v1651_v18 = vsub.f32 %v1641_v50, %v1649_v6  ;;  %v3006_v6 = vld [vmem:[%s4040_s23 + $0x38] sm:$0xff] }
 0x53f   : > { %1811 = vmatpush.bf16.msrb.mxu1 %v3006_v6  ;;  %v2841_v6 = vld [vmem:[%s4055_s11 + $0x40] sm:$0xf] }
 0x540   : > { %v3215_v7 = vpop.eup %3214  ;;  %v1654_v19 = vmul.f32 1.442695, %v1651_v18 }
 0x541   : > { %v1544_v8 = vsel %vm1292_vm10, %v3215_v7, 0.0 }
 0x542   : > { %v3217_v9 = vpop.eup %3216  ;;  %1545 = vadd.xlane.f32.xlu2 %v1544_v8  ;;  %v3004_v8 = vld [vmem:[%s4040_s23 + $0x28] sm:$0xff] }
 0x543   : > { %v1656_v10 = vsel %vm1292_vm10, %v3217_v9, 0.0  ;;  %v3219_v11 = vpop.eup %3218 }
 0x544   : > { %1657 = vadd.xlane.f32.xlu1 %v1656_v10  ;;  %v1547_v12 = vsel %vm1292_vm10, %v3219_v11, 0.0  ;;  %v3002_v10 = vld [vmem:[%s4040_s23 + $0x18] sm:$0xff] }
 0x545   : > { %v1431_v60 = vpop.xlane.xlu2 %1430 }
 0x546   : > { %3220 = vrcp.f32 %v1431_v60  ;;  %v3001_v60 = vld [vmem:[%s4040_s23 + $0x10] sm:$0xff] }
 0x547   : > { %3222 = vpow2.f32 %v1654_v19 }
 0x54a   : > { %1548 = vadd.xlane.f32.xlu2 %v1547_v12  ;;  %v1466_v13 = vpop.permute.xlu0 %1465  ;;  %v2999_v12 = vld [vmem:[%s4040_s23] sm:$0xff] }
 0x54b   : > { %v1471_v14 = vsel %vm1320_vm9, %v1466_v13, 0 }
 0x54c   : > { %v3221_v15 = vpop.eup %3220  ;;  %1480 = vmatpush.bf16.msra.mxu0 %v1471_v14 }
 0x54d   : > { %v1435_v16 = vmul.f32 %v3221_v15, %v3211_v53  ;;  %v3223_v20 = vpop.eup %3222 }
 0x54e   : > { %1577 = vrot.lane.b32.xlu0 %v1464_v33, %s3673_s7  ;;  %v1659_v21 = vsel %vm1292_vm10, %v3223_v20, 0.0 }
 0x54f   : > { %v1437_v17 = vpack.c.bf16 %v1435_v16, %v1435_v16 }
 0x551   : > { %2766 = vmatmul.msk.bf16.vlgmr.msra.gmra.mxu0 %vm1292_vm10, %v1437_v17 }
 0x562   : > { %1556 = vrot.lane.b32.xlu2 %v4194_v5, %s3673_s7 }
 0x56a   : > { %1668 = vrot.lane.b32.xlu2 %v4194_v5, %s3674_s9 }
 0x572   : > { %1689 = vrot.lane.b32.xlu2 %v1464_v33, %s3674_s9 }
 0x578   : > { %1660 = vadd.xlane.f32.xlu0 %v1659_v21 }
 0x5ad   : > { %v1428_v22 = vpop.xlane.xlu0 %1427 }
 0x5ae   : > { %3224 = vrcp.f32 %v1428_v22 }
 0x5b4   : > { %v3225_v23 = vpop.eup %3224 }
 0x5b5   : > { %v1434_v24 = vmul.f32 %v3225_v23, %v3213_v62  ;;  %v1546_v25 = vpop.xlane.xlu2 %1545 }
 0x5b6   : > { %3226 = vrcp.f32 %v1546_v25 }
 0x5b7   : > { %v1436_v28 = vpack.c.bf16 %v1434_v24, %v1434_v24  ;;  %v1658_v40 = vpop.xlane.xlu1 %1657 }
 0x5b9   : > { %2765 = vmatmul.msk.bf16.vlgmr.msra.gmra.mxu3 %vm1292_vm10, %v1436_v28 }
 0x5bc   : > { %v3227_v5 = vpop.eup %3226 }
 0x5bd   : > { %v1549_v27 = vpop.xlane.xlu2 %1548  ;;  %v1552_v34 = vmul.f32 %v3227_v5, %v3215_v7  ;;  %v3005_v7 = vld [vmem:[%s4040_s23 + $0x30] sm:$0xff]  ;;  %v3196_v5 = vld [vmem:[%s4459_s0] ss:$0 sm:$0xff] }
 0x5be   : > { %3228 = vrcp.f32 %v1549_v27  ;;  %1812 = vmatpush.bf16.msrb.mxu1 %v3005_v7  ;;  %v3016_v7 = vld [vmem:[%s4055_s11 + $0x44] sm:$0xf0] }
 0x5bf   : > { %v1554_v39 = vpack.c.bf16 %v1552_v34, %v1552_v34  ;;  %3230 = vrcp.f32 %v1658_v40 }
 0x5c0   : > { %v1578_v29 = vpop.permute.xlu0 %1577 }
 0x5c1   : > { %v1583_v30 = vsel %vm1320_vm9, %v1578_v29, 0 }
 0x5c2   : > { %1592 = vmatpush.bf16.msrb.mxu0 %v1583_v30  ;;  %1813 = vmatpush.bf16.msrb.mxu1 %v3004_v8  ;;  %v3015_v8 = vld [vmem:[%s4055_s11 + $0x44] sm:$0xf] }
 0x5c4   : > { %v3229_v31 = vpop.eup %3228 }
 0x5c5   : > { %v1553_v35 = vmul.f32 %v3229_v31, %v3219_v11  ;;  %v1557_v36 = vpop.permute.xlu2 %1556  ;;  %v3231_v47 = vpop.eup %3230  ;;  %v3000_v11 = vld [vmem:[%s4040_s23 + $0x8] sm:$0xff] }
 0x5c6   : > { %v1562_v37 = vsel %vm1320_vm9, %v1557_v36, 0  ;;  %v1664_v48 = vmul.f32 %v3231_v47, %v3217_v9  ;;  %v3003_v9 = vld [vmem:[%s4040_s23 + $0x20] sm:$0xff] }
 0x5c7   : > { %v1555_v38 = vpack.c.bf16 %v1553_v35, %v1553_v35  ;;  %1571 = vmatpush.bf16.msrb.mxu3 %v1562_v37  ;;  %1814 = vmatpush.bf16.msrb.mxu1 %v3003_v9  ;;  %v2842_v9 = vor.u32 %v3016_v7, %v2841_v6  ;;  %v3028_v6 = vld [vmem:[%s4021_s16 + $0x28] sm:$0xff] }
 0x5c8   : > { %v1666_v52 = vpack.c.bf16 %v1664_v48, %v1664_v48  ;;  %v3036_v7 = vld [vmem:[%s4021_s16 + $0x68] sm:$0xff] }
 0x5c9   : > { %2770 = vmatmul.msk.bf16.vlgmr.msrb.gmra.mxu0 %vm1292_vm10, %v1555_v38 }
 0x5ca   : > { %2769 = vmatmul.msk.bf16.vlgmr.msrb.gmra.mxu3 %vm1292_vm10, %v1554_v39 }
 0x5cb   : > { %1815 = vmatpush.bf16.msrb.mxu1 %v3002_v10  ;;  %v2843_v10 = vld [vmem:[%s4055_s11 + $0x48] sm:$0xf0] }
 0x5cd   : > { %v1669_v43 = vpop.permute.xlu2 %1668 }
 0x5ce   : > { %v1674_v44 = vsel %vm1320_vm9, %v1669_v43, 0  ;;  %v1482_v46 = vpop.f32.mrf.mxu0 }
 0x5cf   : > { %1683 = vmatpush.bf16.msra.mxu3 %v1674_v44  ;;  %1816 = vmatpush.bf16.msrb.mxu1 %v3001_v60  ;;  %v2846_v60 = vor.u32 %v3015_v8, %v2843_v10  ;;  %v3027_v8 = vld [vmem:[%s4021_s16 + $0x20] sm:$0xff]  ;;  %v3026_v10 = vld [vmem:[%s4021_s16 + $0x18] sm:$0xff] }
 0x5d3   : > { %1817 = vmatpush.bf16.msrb.mxu1 %v3000_v11  ;;  %v2833_v11 = vld [vmem:[%s4055_s11 + $0x30] sm:$0xf] }
 0x5d5   : > { %v1690_v49 = vpop.permute.xlu2 %1689 }
 0x5d6   : > { %v1695_v50 = vsel %vm1320_vm9, %v1690_v49, 0  ;;  %v1484_v51 = vpop.f32.mrf.mxu0 }
 0x5d7   : > { %1704 = vmatpush.bf16.msra.mxu0 %v1695_v50  ;;  %1818 = vmatpush.bf16.msrb.mxu1 %v2999_v12  ;;  %v3014_v12 = vld [vmem:[%s4055_s11 + $0x34] sm:$0xf0] }
 0x5da   : > { %2773 = vmatmul.msk.bf16.vlgmr.msra.gmra.mxu3 %vm1292_vm10, %v1666_v52  ;;  %v2865_v52 = vld [vmem:[%s4055_s11 + $0x70] sm:$0xf] }
 0x5eb   : > { %v1661_v53 = vpop.xlane.xlu0 %1660 }
 0x5ec   : > { %3232 = vrcp.f32 %v1661_v53  ;;  %v3022_v53 = vld [vmem:[%s4055_s11 + $0x74] sm:$0xf0] }
 0x5f2   : > { %v3233_v54 = vpop.eup %3232 }
 0x5f3   : > { %v1665_v55 = vmul.f32 %v3233_v54, %v3223_v20  ;;  %v3021_v54 = vld [vmem:[%s4055_s11 + $0x74] sm:$0xf] }
 0x5f5   : > { %v1667_v33 = vpack.c.bf16 %v1665_v55, %v1665_v55  ;;  %v2866_v55 = vor.u32 %v3022_v53, %v2865_v52 }
 0x5f7   : > { %2774 = vmatmul.msk.bf16.vlgmr.msra.gmra.mxu0 %vm1292_vm10, %v1667_v33  ;;  %v2867_v33 = vld [vmem:[%s4055_s11 + $0x78] sm:$0xf0]  ;;  %1989 = vmatpush.bf16.msra.mxu2 %v2866_v55  ;;  %vm2295_vm10 = vcmask 1041409  }
 0x63c   : > { %v1458_v56 = vpop.f32.mrf.mxu3 }
 0x63d   : > { %v3181_v57 = vpack.i.bf16 %v1482_v46, %v1458_v56  ;;  %v2870_v56 = vor.u32 %v3021_v54, %v2867_v33 }
 0x63f   : > { %3182 = vrot.lane.b32.xlu2 %v3181_v57, %s3674_s9  ;;  %2003 = vmatpush.bf16.msrb.mxu3 %v2870_v56  ;;  %v2857_v57 = vld [vmem:[%s4055_s11 + $0x60] sm:$0xf] }
 0x644   : > { %v1460_v58 = vpop.f32.mrf.mxu3 }
 0x645   : > { %v3020_v58 = vld [vmem:[%s4055_s11 + $0x64] sm:$0xf0] }
 0x646   : > { %v1594_v59 = vpop.f32.mrf.mxu0 }
 0x64d   : > { %v1573_v41 = vpop.f32.mrf.mxu3 }
 0x64e   : > { %v3186_v61 = vpack.i.bf16 %v1594_v59, %v1573_v41  ;;  %v1596_v62 = vpop.f32.mrf.mxu0  ;;  %v3019_v59 = vld [vmem:[%s4055_s11 + $0x64] sm:$0xf]  ;;  %v2858_v41 = vor.u32 %v3020_v58, %v2857_v57  ;;  %v3197_v57 = vld [vmem:[%s946_s29] ss:$0 sm:$0xff]  ;;  %s4464_s29 = scalar_lea.vmem [#allocation16], %s4006_s28 }
 0x650   : > { %3187 = vrot.lane.b32.xlu1 %v3186_v61, %s3673_s7  ;;  %v2859_v61 = vld [vmem:[%s4055_s11 + $0x68] sm:$0xf0]  ;;  %1990 = vmatpush.bf16.msra.mxu2 %v2858_v41 }
 0x651   : > { %v2862_v62 = vor.u32 %v3019_v59, %v2859_v61 }
 0x653   : > { %2004 = vmatpush.bf16.msrb.mxu3 %v2862_v62  ;;  %v3198_v62 = vld [vmem:[%s4461_s5] ss:$0 sm:$0xff] }
 0x655   : > { %v1575_v63 = vpop.f32.mrf.mxu3 }
 0x656   : > { %v2849_v63 = vld [vmem:[%s4055_s11 + $0x50] sm:$0xf] }
 0x65d   : > { %v1685_v0 = vpop.f32.mrf.mxu3 }
 0x665   : > { %v1687_v1 = vpop.f32.mrf.mxu3 }
 0x666   : > { %v3017_v1 = vld [vmem:[%s4055_s11 + $0x54] sm:$0xf] }
 0x674   : > { %v1706_v3 = vpop.f32.mrf.mxu0 }
 0x675   : > { %v3191_v2 = vpack.i.bf16 %v1706_v3, %v1685_v0  ;;  %v3018_v0 = vld [vmem:[%s4055_s11 + $0x54] sm:$0xf0] }
 0x676   : > { %v2850_v3 = vor.u32 %v3018_v0, %v2849_v63 }
 0x677   : > { %3192 = vrot.lane.b32.xlu2 %v3191_v2, %s3672_s3  ;;  %v2851_v2 = vld [vmem:[%s4055_s11 + $0x58] sm:$0xf0] }
 0x678   : > { %1991 = vmatpush.bf16.msra.mxu2 %v2850_v3  ;;  %v3030_v3 = vld [vmem:[%s4021_s16 + $0x38] sm:$0xff] }
 0x679   : > { %2187 = vmatpush.bf16.msrb.mxu0 %v3030_v3 }
 0x67c   : > { %v1708_v4 = vpop.f32.mrf.mxu0  ;;  %1992 = vmatpush.bf16.msra.mxu2 %v2842_v9  ;;  %v3035_v9 = vld [vmem:[%s4021_s16 + $0x60] sm:$0xff] }
 0x67d   : > { %v2854_v4 = vor.u32 %v3017_v1, %v2851_v2  ;;  %v3029_v2 = vld [vmem:[%s4021_s16 + $0x30] sm:$0xff] }
 0x67e   : > { %2188 = vmatpush.bf16.msrb.mxu0 %v3029_v2 }
 0x67f   : > { %2005 = vmatpush.bf16.msrb.mxu3 %v2854_v4  ;;  %v3037_v4 = vld [vmem:[%s4021_s16 + $0x70] sm:$0xff] }
 0x682   : > { %2189 = vmatpush.bf16.msrb.mxu0 %v3028_v6 }
 0x683   : > { %2006 = vmatpush.bf16.msrb.mxu3 %v2846_v60  ;;  %v3034_v60 = vld [vmem:[%s4021_s16 + $0x58] sm:$0xff] }
 0x686   : > { %2190 = vmatpush.bf16.msrb.mxu0 %v3027_v8 }
 0x68a   : > { %2191 = vmatpush.bf16.msrb.mxu0 %v3026_v10 }
 0x699   : > { %v3183_v13 = vpop.permute.xlu2 %3182 }
 0x69a   : > { %v3185_v15 = vunpack.i.h.bf16 %v3183_v13  ;;  %v3184_v16 = vunpack.i.l.bf16 %v3183_v13  ;;  %v3013_v13 = vld [vmem:[%s4055_s11 + $0x34] sm:$0xf] }
 0x69c   : > { %v1735_v20 = vsel %vm1253_vm8, %v4215_v32, %v3185_v15  ;;  %v1734_v21 = vsel %vm1253_vm8, %v4212_v26, %v3184_v16  ;;  %v3675_v26 = vmov 128.0   ;;  %v2835_v15 = vld [vmem:[%s4055_s11 + $0x38] sm:$0xf0] }
 0x69d   : > { %3234 = vrcp.f32 %v3675_v26  ;;  %v2838_v16 = vor.u32 %v3013_v13, %v2835_v15  ;;  %v1902_v13 = vld [vmem:[%s4019_s6] sm:$0x3]  ;;  %v3032_v15 = vld [vmem:[%s4021_s16 + $0x48] sm:$0xff]  ;;  %s4462_s6 = scalar_lea.vmem [#allocation14], %s4006_s28 }
 0x69e   : > { %v3199_v6 = vld [vmem:[%s4462_s6] ss:$0 sm:$0xff] }
 0x69f   : > { %2007 = vmatpush.bf16.msrb.mxu3 %v2838_v16  ;;  %v1905_v16 = vperm.slane %v1902_v13, 0 }
 0x6a3   : > { %v3235_v37 = vpop.eup %3234 }
 0x6a4   : > { %v1834_v38 = vmul.f32 128.0, %v3235_v37  ;;  %vm1838_vm13 = vweird.f32 %v3235_v37 }
 0x6a6   : > { %v1835_v39 = vsub.f32 1.0, %v1834_v38 }
 0x6a8   : > { %v1836_v40 = vmul.f32 %v3235_v37, %v1835_v39 }
 0x6aa   : > { %v1837_v43 = vadd.f32 %v3235_v37, %v1836_v40 }
 0x6ac   : > { %v4270_v44 = vsel %vm1838_vm13, %v3235_v37, %v1837_v43 }
 0x6c2   : > { %v3188_v14 = vpop.permute.xlu1 %3187 }
 0x6c3   : > { %v3190_v17 = vunpack.i.h.bf16 %v3188_v14  ;;  %v3189_v18 = vunpack.i.l.bf16 %v3188_v14  ;;  %v2834_v14 = vor.u32 %v3014_v12, %v2833_v11  ;;  %v3025_v11 = vld [vmem:[%s4021_s16 + $0x10] sm:$0xff] }
 0x6c4   : > { %v3033_v12 = vld [vmem:[%s4021_s16 + $0x50] sm:$0xff]  ;;  %2192 = vmatpush.bf16.msrb.mxu0 %v3025_v11 }
 0x6c5   : > { %v1738_v24 = vsel %vm1736_vm11, %v1735_v20, %v3190_v17  ;;  %v1737_v25 = vsel %vm1736_vm11, %v1734_v21, %v3189_v18  ;;  %1993 = vmatpush.bf16.msra.mxu2 %v2834_v14  ;;  %v2825_v17 = vld [vmem:[%s4055_s11 + $0x20] sm:$0xf]  ;;  %v3012_v18 = vld [vmem:[%s4055_s11 + $0x24] sm:$0xf0]  ;;  %v2827_v21 = vld [vmem:[%s4055_s11 + $0x28] sm:$0xf0] }
 0x6c6   : > { %v2826_v20 = vor.u32 %v3012_v18, %v2825_v17  ;;  %v3024_v14 = vld [vmem:[%s4021_s16 + $0x8] sm:$0xff]  ;;  %v1906_v17 = vperm.slane %v1902_v13, 1  ;;  %vm2361_vm11 = vcmask 58368  }
 0x6c8   : > { %2193 = vmatpush.bf16.msrb.mxu0 %v3024_v14 }
 0x6c9   : > { %1994 = vmatpush.bf16.msra.mxu2 %v2826_v20  ;;  %v3023_v20 = vld [vmem:[%s4021_s16] sm:$0xff] }
 0x6cc   : > { %2194 = vmatpush.bf16.msrb.mxu0 %v3023_v20 }
 0x6d1   : > { %v3193_v19 = vpop.permute.xlu2 %3192 }
 0x6d2   : > { %v3195_v22 = vunpack.i.h.bf16 %v3193_v19  ;;  %v3194_v23 = vunpack.i.l.bf16 %v3193_v19  ;;  %v3011_v19 = vld [vmem:[%s4055_s11 + $0x24] sm:$0xf] }
 0x6d4   : > { %v1741_v28 = vsel %vm1739_vm12, %v1738_v24, %v3195_v22  ;;  %v1740_v27 = vsel %vm1739_vm12, %v1737_v25, %v3194_v23  ;;  %v2830_v22 = vor.u32 %v3011_v19, %v2827_v21  ;;  %v2817_v23 = vld [vmem:[%s4055_s11 + $0x10] sm:$0xf]  ;;  %v3010_v24 = vld [vmem:[%s4055_s11 + $0x14] sm:$0xf0]  ;;  %v3009_v25 = vld [vmem:[%s4055_s11 + $0x14] sm:$0xf] }
 0x6d5   : > { %v1759_v29 = vpack.c.bf16 %v1741_v28, %v1740_v27  ;;  %v2818_v28 = vor.u32 %v3010_v24, %v2817_v23  ;;  %v2819_v27 = vld [vmem:[%s4055_s11 + $0x18] sm:$0xf0] }
 0x6d6   : > { %2008 = vmatpush.bf16.msrb.mxu3 %v2830_v22  ;;  %v3031_v21 = vld [vmem:[%s4021_s16 + $0x40] sm:$0xff] }
 0x6d7   : > { %1819 = vmatmul.bf16.vlgmr.msrb.gmra.mxu1 %v1759_v29  ;;  %v2809_v29 = vld [vmem:[%s4055_s11] sm:$0xf]  ;;  %1995 = vmatpush.bf16.msra.mxu2 %v2818_v28 }
 0x754   : > { %v1820_v30 = vpop.f32.mrf.mxu1 }
 0x755   : > { %v1821_v31 = vadd.f32 %v3196_v5, %v1820_v30 }
 0x757   : > { %v1825_v34 = vadd.f32 %v1821_v31, %v4112_v42  ;;  %v2822_v31 = vor.u32 %v3009_v25, %v2819_v27 }
 0x759   : > { %1829 = vadd.xlane.f32.xlu0 %v1825_v34  ;;  %2009 = vmatpush.bf16.msrb.mxu3 %v2822_v31 }
 0x75c   : > { %v1822_v35 = vpop.f32.mrf.mxu1 }
 0x75d   : > { %v1823_v32 = vadd.f32 %v3196_v5, %v1822_v35  ;;  %v3008_v5 = vld [vmem:[%s4055_s11 + $0x4] sm:$0xf0]  ;;  %v2811_v35 = vld [vmem:[%s4055_s11 + $0x8] sm:$0xf0] }
 0x75f   : > { %v1826_v36 = vadd.f32 %v1823_v32, %v4114_v45 }
 0x761   : > { %1831 = vadd.xlane.f32.xlu2 %v1826_v36 }
 0x7cc   : > { %v1830_v42 = vpop.xlane.xlu0 %1829 }
 0x7cd   : > { %v1840_v46 = vmul.f32 %v4270_v44, %v1830_v42 }
 0x7cf   : > { %v4273_v47 = vsub.f32 %v1825_v34, %v1840_v46  ;;  %v3007_v34 = vld [vmem:[%s4055_s11 + $0x4] sm:$0xf] }
 0x7d0   : > { %v2814_v26 = vor.u32 %v3007_v34, %v2811_v35 }
 0x7d1   : > { %v1844_v45 = vmul.f32 %v4273_v47, %v4273_v47 }
 0x7d2   : > { %2010 = vmatpush.bf16.msrb.mxu3 %v2814_v26 }
 0x7d3   : > { %1846 = vadd.xlane.f32.xlu0 %v1844_v45 }
 0x7d4   : > { %v1832_v48 = vpop.xlane.xlu2 %1831 }
 0x7d5   : > { %v1841_v49 = vmul.f32 %v4270_v44, %v1832_v48 }
 0x7d7   : > { %v4278_v50 = vsub.f32 %v1826_v36, %v1841_v49  ;;  %v2810_v36 = vor.u32 %v3008_v5, %v2809_v29 }
 0x7d9   : > { %v1845_v51 = vmul.f32 %v4278_v50, %v4278_v50  ;;  %1996 = vmatpush.bf16.msra.mxu2 %v2810_v36 }
 0x7db   : > { %1848 = vadd.xlane.f32.xlu0 %v1845_v51 }
 0x846   : > { %v1847_v30 = vpop.xlane.xlu0 %1846 }
 0x847   : > { %v1850_v32 = vmul.f32 %v1847_v30, %v4270_v44 }
 0x849   : > { %v1852_v37 = vadd.f32 1e-12, %v1850_v32 }
 0x84b   : > { %3236 = vrsqrt.f32 %v1852_v37  ;;  %vm1860_vm15 = vweird.f32 %v1852_v37 }
 0x84e   : > { %v1849_v38 = vpop.xlane.xlu0 %1848 }
 0x84f   : > { %v1851_v39 = vmul.f32 %v1849_v38, %v4270_v44 }
 0x851   : > { %v3237_v40 = vpop.eup %3236  ;;  %v1853_v43 = vadd.f32 1e-12, %v1851_v39 }
 0x852   : > { %v1855_v42 = vmul.f32 %v3237_v40, %v1852_v37  ;;  %vm1861_vm14 = vweird.f32 %v3237_v40 }
 0x853   : > { %3238 = vrsqrt.f32 %v1853_v43  ;;  %vm1862_vm0 = vmor %vm1860_vm15, %vm1861_vm14  ;;  %vm1870_vm2 = vweird.f32 %v1853_v43 }
 0x854   : > { %v1856_v46 = vmul.f32 %v3237_v40, %v1855_v42 }
 0x856   : > { %v1857_v45 = vmul.f32 0.5, %v1856_v46 }
 0x858   : > { %v1858_v48 = vsub.f32 1.5, %v1857_v45 }
 0x859   : > { %v3239_v49 = vpop.eup %3238 }
 0x85a   : > { %v1859_v51 = vmul.f32 %v3237_v40, %v1858_v48  ;;  %v1865_v52 = vmul.f32 %v3239_v49, %v1853_v43  ;;  %vm1871_vm1 = vweird.f32 %v3239_v49 }
 0x85b   : > { %vm1872_vm3 = vmor %vm1870_vm2, %vm1871_vm1 }
 0x85c   : > { %v1866_v53 = vmul.f32 %v3239_v49, %v1865_v52  ;;  %v1863_v54 = vsel %vm1862_vm0, %v3237_v40, %v1859_v51 }
 0x85d   : > { %v1874_v56 = vmul.f32 %v1863_v54, %v4273_v47 }
 0x85e   : > { %v1867_v55 = vmul.f32 0.5, %v1866_v53 }
 0x85f   : > { %v1879_v61 = vmul.f32 %v3197_v57, %v1874_v56 }
 0x860   : > { %v1868_v33 = vsub.f32 1.5, %v1867_v55 }
 0x861   : > { %v4325_v63 = vadd.f32 %v3198_v62, %v1879_v61 }
 0x862   : > { %v1869_v58 = vmul.f32 %v3239_v49, %v1868_v33 }
 0x864   : > { %v1873_v59 = vsel %vm1872_vm3, %v3239_v49, %v1869_v58 }
 0x865   : > { %v1875_v41 = vmul.f32 %v1873_v59, %v4278_v50  ;;  %v3038_v50 = vld [vmem:[%s4021_s16 + $0x78] sm:$0xff]  ;;  %s4463_s16 = scalar_lea.vmem [#allocation15], %s4006_s28  ;;  %s4465_s28 = sld [smem:[#allocation26_spill]] }
 0x866   : > { %2201 = vmatpush.bf16.msra.mxu1 %v3038_v50 }
 0x867   : > { %v1880_v47 = vmul.f32 %v3197_v57, %v1875_v41 }
 0x869   : > { %v4327_v0 = vadd.f32 %v3198_v62, %v1880_v47 }
 0x86a   : > { %2202 = vmatpush.bf16.msra.mxu1 %v3037_v4 }
 0x86b   : > { %v1903_v1 = vpack.c.bf16 %v4327_v0, %v4325_v63  ;;  %p2967_p5 = scmp.ne.s32.totalorder %s4465_s28, 3 }
 0x86d   : > { %1997 = vmatmul.bf16.vlgmr.msra.gmra.mxu2 %v1903_v1  ;;  %2011 = vmatmul.bf16.vlgmr.msrb.gmra.mxu3 %v1903_v1 }
 0x86e   : > { %2203 = vmatpush.bf16.msra.mxu1 %v3036_v7 }
 0x872   : > { %2204 = vmatpush.bf16.msra.mxu1 %v3035_v9 }
 0x876   : > { %2205 = vmatpush.bf16.msra.mxu1 %v3034_v60 }
 0x87a   : > { %2206 = vmatpush.bf16.msra.mxu1 %v3033_v12 }
 0x87e   : > { %2207 = vmatpush.bf16.msra.mxu1 %v3032_v15 }
 0x882   : > { %2208 = vmatpush.bf16.msra.mxu1 %v3031_v21 }
 0x8f0   : > { %v1998_v18 = vpop.f32.mrf.mxu2  ;;  %v2012_v19 = vpop.f32.mrf.mxu3 }
 0x8f1   : > { %v1999_v22 = vadd.f32 %v1998_v18, %v1905_v16  ;;  %v2013_v23 = vadd.f32 %v2012_v19, %v1906_v17 }
 0x8f3   : > { %v2017_v24 = vmul.f32 %v1999_v22, %v1999_v22  ;;  %v2018_v25 = vmul.f32 %v2013_v23, %v2013_v23 }
 0x8f5   : > { %v2021_v28 = vmul.f32 %v2017_v24, %v1999_v22  ;;  %v2022_v27 = vmul.f32 %v2018_v25, %v2013_v23  ;;  %v3044_v24 = vld [vmem:[%s4060_s20 + $0x28] sm:$0xff]  ;;  %v3043_v25 = vld [vmem:[%s4060_s20 + $0x20] sm:$0xff] }
 0x8f7   : > { %v2025_v29 = vmul.f32 0.044715, %v2021_v28  ;;  %v2026_v5 = vmul.f32 0.044715, %v2022_v27  ;;  %v3042_v28 = vld [vmem:[%s4060_s20 + $0x18] sm:$0xff] }
 0x8f8   : > { %v2000_v30 = vpop.f32.mrf.mxu2  ;;  %v2014_v31 = vpop.f32.mrf.mxu3 }
 0x8f9   : > { %v2029_v34 = vadd.f32 %v2025_v29, %v1999_v22  ;;  %v2030_v35 = vadd.f32 %v2026_v5, %v2013_v23  ;;  %v2001_v32 = vadd.f32 %v2000_v30, %v1905_v16  ;;  %v2015_v36 = vadd.f32 %v2014_v31, %v1906_v17  ;;  %v3041_v29 = vld [vmem:[%s4060_s20 + $0x10] sm:$0xff]  ;;  %v3040_v31 = vld [vmem:[%s4060_s20 + $0x8] sm:$0xff] }
 0x8fb   : > { %v2033_v26 = vmul.f32 0.7978846, %v2029_v34  ;;  %v2019_v37 = vmul.f32 %v2001_v32, %v2001_v32  ;;  %v2020_v38 = vmul.f32 %v2015_v36, %v2015_v36  ;;  %v2034_v39 = vmul.f32 0.7978846, %v2030_v35  ;;  %v3039_v34 = vld [vmem:[%s4060_s20] sm:$0xff] }
 0x8fd   : > { %v2023_v40 = vmul.f32 %v2019_v37, %v2001_v32  ;;  %v2024_v43 = vmul.f32 %v2020_v38, %v2015_v36  ;;  %3240 = vtanh.f32 %v2033_v26 }
 0x8fe   : > { %3242 = vtanh.f32 %v2034_v39 }
 0x8ff   : > { %v2027_v42 = vmul.f32 0.044715, %v2023_v40  ;;  %v2028_v46 = vmul.f32 0.044715, %v2024_v43 }
 0x901   : > { %v2031_v45 = vadd.f32 %v2027_v42, %v2001_v32  ;;  %v2032_v48 = vadd.f32 %v2028_v46, %v2015_v36 }
 0x903   : > { %v2035_v49 = vmul.f32 0.7978846, %v2031_v45  ;;  %v2036_v51 = vmul.f32 0.7978846, %v2032_v48  ;;  %v3241_v52 = vpop.eup %3240  ;;  %v3200_v45 = vld [vmem:[%s4463_s16] ss:$0 sm:$0xff] }
 0x904   : > { %v3243_v53 = vpop.eup %3242  ;;  %v2041_v54 = vadd.f32 1.0, %v3241_v52 }
 0x905   : > { %3244 = vtanh.f32 %v2035_v49  ;;  %v2042_v55 = vadd.f32 1.0, %v3243_v53 }
 0x906   : > { %3246 = vtanh.f32 %v2036_v51  ;;  %v2045_v57 = vmul.f32 0.5, %v2041_v54 }
 0x907   : > { %v2046_v59 = vmul.f32 0.5, %v2042_v55 }
 0x908   : > { %v2049_v47 = vmul.f32 %v2045_v57, %v1999_v22 }
 0x909   : > { %v2050_v3 = vmul.f32 %v2046_v59, %v2013_v23  ;;  %v3046_v23 = vld [vmem:[%s4060_s20 + $0x38] sm:$0xff] }
 0x90a   : > { %2347 = vmatpush.bf16.msrb.mxu2 %v3046_v23 }
 0x90b   : > { %v3245_v33 = vpop.eup %3244 }
 0x90c   : > { %v3247_v56 = vpop.eup %3246  ;;  %v2043_v58 = vadd.f32 1.0, %v3245_v33 }
 0x90d   : > { %v2044_v41 = vadd.f32 1.0, %v3247_v56 }
 0x90e   : > { %v2047_v61 = vmul.f32 0.5, %v2043_v58 }
 0x90f   : > { %v2048_v62 = vmul.f32 0.5, %v2044_v41 }
 0x910   : > { %v2051_v1 = vmul.f32 %v2047_v61, %v2001_v32 }
 0x911   : > { %v2052_v50 = vmul.f32 %v2048_v62, %v2015_v36 }
 0x912   : > { %v2086_v2 = vpack.c.bf16 %v2051_v1, %v2049_v47 }
 0x913   : > { %v2087_v4 = vpack.c.bf16 %v2052_v50, %v2050_v3 }
 0x914   : > { %2195 = vmatmul.bf16.vlgmr.msrb.gmra.mxu0 %v2086_v2  ;;  %v2271_v2 = vld [vmem:[#allocation3] sm:$0x3] }
 0x915   : > { %2209 = vmatmul.bf16.vlgmr.msra.gmra.mxu1 %v2087_v4 }
 0x991   : > { %v2196_v7 = vpop.f32.mrf.mxu0 }
 0x992   : > { %v2197_v8 = vadd.f32 %v3199_v6, %v2196_v7  ;;  %v2210_v9 = vpop.f32.mrf.mxu1 }
 0x994   : > { %v2211_v10 = vadd.f32 %v2210_v9, %v2197_v8 }
 0x996   : > { %v2215_v60 = vadd.f32 %v2211_v10, %v4325_v63 }
 0x998   : > { %2219 = vadd.xlane.f32.xlu0 %v2215_v60 }
 0x999   : > { %v2198_v11 = vpop.f32.mrf.mxu0 }
 0x99a   : > { %v2199_v12 = vadd.f32 %v3199_v6, %v2198_v11  ;;  %v2212_v13 = vpop.f32.mrf.mxu1 }
 0x99c   : > { %v2213_v14 = vadd.f32 %v2212_v13, %v2199_v12 }
 0x99e   : > { %v2216_v15 = vadd.f32 %v2213_v14, %v4327_v0  ;;  %v3045_v0 = vld [vmem:[%s4060_s20 + $0x30] sm:$0xff] }
 0x99f   : > { %2348 = vmatpush.bf16.msrb.mxu2 %v3045_v0 }
 0x9a0   : > { %2221 = vadd.xlane.f32.xlu1 %v2216_v15 }
 0x9a3   : > { %2349 = vmatpush.bf16.msrb.mxu2 %v3044_v24 }
 0x9a7   : > { %2350 = vmatpush.bf16.msrb.mxu2 %v3043_v25 }
 0x9ab   : > { %2351 = vmatpush.bf16.msrb.mxu2 %v3042_v28 }
 0x9af   : > { %2352 = vmatpush.bf16.msrb.mxu2 %v3041_v29 }
 0x9b3   : > { %2353 = vmatpush.bf16.msrb.mxu2 %v3040_v31 }
 0x9b7   : > { %2354 = vmatpush.bf16.msrb.mxu2 %v3039_v34 }
 0xa0b   : > { %v2220_v18 = vpop.xlane.xlu0 %2219 }
 0xa0c   : > { %v2223_v63 = vmul.f32 %v2220_v18, %v4270_v44 }
 0xa0e   : > { %v2225_v21 = vsub.f32 %v2215_v60, %v2223_v63 }
 0xa10   : > { %v2227_v22 = vmul.f32 %v2225_v21, %v2225_v21 }
 0xa13   : > { %v2222_v16 = vpop.xlane.xlu1 %2221 }
 0xa14   : > { %v2224_v17 = vmul.f32 %v2222_v16, %v4270_v44 }
 0xa16   : > { %v2226_v19 = vsub.f32 %v2216_v15, %v2224_v17 }
 0xa18   : > { %v2228_v20 = vmul.f32 %v2226_v19, %v2226_v19 }
 0xa1a   : > { %2231 = vadd.xlane.f32.xlu0 %v2228_v20 }
 0xa22   : > { %2229 = vadd.xlane.f32.xlu0 %v2227_v22 }
 0xa8d   : > { %v2232_v27 = vpop.xlane.xlu0 %2231 }
 0xa8e   : > { %v2234_v5 = vmul.f32 %v2232_v27, %v4270_v44 }
 0xa90   : > { %v2236_v30 = vadd.f32 1e-12, %v2234_v5 }
 0xa92   : > { %3248 = vrsqrt.f32 %v2236_v30  ;;  %vm2253_vm5 = vweird.f32 %v2236_v30 }
 0xa95   : > { %v2230_v35 = vpop.xlane.xlu0 %2229 }
 0xa96   : > { %v2233_v32 = vmul.f32 %v2230_v35, %v4270_v44  ;;  %v3201_v44 = vld [vmem:[%s4464_s29] ss:$0 sm:$0xff] }
 0xa98   : > { %v3249_v36 = vpop.eup %3248  ;;  %v2235_v26 = vadd.f32 1e-12, %v2233_v32 }
 0xa99   : > { %v2248_v37 = vmul.f32 %v3249_v36, %v2236_v30  ;;  %vm2254_vm4 = vweird.f32 %v3249_v36 }
 0xa9a   : > { %3250 = vrsqrt.f32 %v2235_v26  ;;  %vm2255_vm6 = vmor %vm2253_vm5, %vm2254_vm4  ;;  %vm2243_vm8 = vweird.f32 %v2235_v26 }
 0xa9b   : > { %v2249_v38 = vmul.f32 %v3249_v36, %v2248_v37 }
 0xa9d   : > { %v2250_v39 = vmul.f32 0.5, %v2249_v38 }
 0xa9f   : > { %v2251_v40 = vsub.f32 1.5, %v2250_v39 }
 0xaa0   : > { %v3251_v43 = vpop.eup %3250 }
 0xaa1   : > { %v2252_v42 = vmul.f32 %v3249_v36, %v2251_v40  ;;  %v2238_v46 = vmul.f32 %v3251_v43, %v2235_v26  ;;  %vm2244_vm7 = vweird.f32 %v3251_v43 }
 0xaa2   : > { %vm2245_vm9 = vmor %vm2243_vm8, %vm2244_vm7 }
 0xaa3   : > { %v2256_v48 = vsel %vm2255_vm6, %v3249_v36, %v2252_v42  ;;  %v2239_v49 = vmul.f32 %v3251_v43, %v2238_v46 }
 0xaa4   : > { %v2258_v51 = vmul.f32 %v2256_v48, %v2226_v19 }
 0xaa5   : > { %v2240_v52 = vmul.f32 0.5, %v2239_v49 }
 0xaa6   : > { %v2263_v53 = vmul.f32 %v3200_v45, %v2258_v51 }
 0xaa7   : > { %v2241_v54 = vsub.f32 1.5, %v2240_v52 }
 0xaa8   : > { %v2268_v55 = vadd.f32 %v3201_v44, %v2263_v53 }
 0xaa9   : > { %v2242_v33 = vmul.f32 %v3251_v43, %v2241_v54 }
 0xaaa   : > { %2270 = vst [vmem:[#allocation2 + $0x8] sm:$0xff] %v2268_v55  ;;  %v2273_v58 = vpack.c.bf16 %v2268_v55, %v2268_v55 }
 0xaab   : > { %v2246_v56 = vsel %vm2245_vm9, %v3251_v43, %v2242_v33 }
 0xaac   : > { %v2257_v57 = vmul.f32 %v2246_v56, %v2225_v21  ;;  %v2293_v61 = vunpack.c.l.b16 %v2273_v58 }
 0xaae   : > { %v2262_v59 = vmul.f32 %v3200_v45, %v2257_v57  ;;  %v2294_v1 = vrot.slane %v2293_v61, 7 }
 0xab0   : > { %v2267_v41 = vadd.f32 %v3201_v44, %v2262_v59 }
 0xab2   : > { %2269 = vst [vmem:[#allocation2] sm:$0xff] %v2267_v41  ;;  %v2272_v62 = vpack.c.bf16 %v2267_v41, %v2267_v41 }
 0xab4   : > { %v2292_v47 = vunpack.c.l.b16 %v2272_v62 }
 0xab6   : > { %v2296_v3 = vsel %vm2295_vm10, %v2294_v1, %v2292_v47 }
 0xab7   : > { %v2297_v50 = vpack.c.b16 %v2296_v3, %v2296_v3 }
 0xab9   : > { %2355 = vmatmul.bf16.vlgmr.msrb.gmra.mxu2 %v2297_v50 }
 0xb3c   : > { %v2356_v4 = vpop.f32.mrf.mxu2 }
 0xb3d   : > { %v2360_v6 = vadd.f32 %v2356_v4, %v2271_v2 }
 0xb3f   : > { %2362 = vst.msk [vmem:[#allocation3] sm:$0x3] %vm2361_vm11, %v2360_v6 }
 0xb40   : > { %2366 = sbr.rel (%p2967_p5) target bundleno = 2890 (0xb4a), region = 144 }
 0xb44   : > { %v2358_v7 = vpop.f32.mrf.mxu2 }
 0xb45   : > { %v3252_v9 = vld [vmem:[#allocation17] ss:$0 sm:$0xff] }
 0xb46   : > { %v2367_v8 = vld [vmem:[#allocation3] sm:$0x3] }
 0xb47   : > { %v2372_v10 = vadd.f32 %v3252_v9, %v2367_v8 }
 0xb49   : > { %2373 = vst.msk [vmem:[#allocation18] sm:$0x3] %vm2361_vm11, %v2372_v10 }
 0xb4a PF: > { %s4466_s2 = sld [smem:[#allocation26_spill]]  ;;  %s3676_s21 = smov [#allocation18]  }
 0xb4b   : > { %s2380_s30 = sshll.u32 %s3676_s21, 4  ;;  %s4467_s10 = sld [smem:[#allocation44_spill]]  ;;  %s2381_s30 = int_to_ptr.vmem [resolvable:$true] %s2380_s30 }
 0xb50   : > { %p3125_p9 = scmp.eq.s32.totalorder %s4466_s2, 3 }
 0xb51   : > { %s2382_s8 = sshll.u32 %s4467_s10, 4  ;;  %s2383_s8 = int_to_ptr.hbm [resolvable:$true] %s2382_s8 }
 0xb52   : > { %3080 = dma.vmem_to_hbm [thread:$0]  (%p3125_p9), %s2381_s30, 32, %s2383_s8, [#allocation6]  }
 0xb53   : > { %3644 = dma.done.wait (%p3125_p9), [#allocation6], 32  }
 0xb54   : > { %3646 = vsyncadd (%p3125_p9), [#allocation6], 4294967264 }
 0xb55 PF: > { %s4468_s30 = sld [smem:[#allocation27_spill]] }
 0xb56   : > { %s4469_s27 = sld [smem:[#allocation24_spill]] }
 0xb57   : > { %s4470_s28 = sld [smem:[#allocation25_spill]] }
 0xb58   : > { %s4471_s29 = sld [smem:[#allocation28_spill]] }
 0xb5b   : > { %p28_p0 = scmp.ge.s32.totalorder %s4468_s30, 6  }
 0xb5d   :  { %30 = sbr.rel (!%p28_p0) target bundleno = 20 (0x14), region = 240 }
 0xb62   :  { %2396 = vsyncpa [#allocation5], 1 }
 0xb63   :  { %2398 = vsyncpa [#allocation5 + $0x1], 1 }
 0xb64   :  { %2399 = vsyncpa [#allocation8], 1 }
 0xb65   :  { %2400 = vsyncpa [#allocation6], 1 }
 0xb66   :  { %2402 = vsyncpa [#allocation6 + $0x1], 1 }

</bundles_post_ra>
